<compile_context>
chip_gen: v7x
topology: tpu7x:2x2x1
jax: 0.10.0
libtpu: 0.0.40
codegen_flags: <defaults>
</compile_context>

<pallas_src>
import functools

import jax
import jax.numpy as jnp
from jax import lax
from jax.experimental import pallas as pl
from jax.experimental.pallas import tpu as pltpu

SCALE = 128.0            # DotReluBlock's fixed dot-product scale
HIDDEN = 32              # config.HIDDEN
ACTION_N = 8             # Action.n : rows of the arg embedding table

LANE = 128
SUBLANE = 8

# Synthetic Action registry (stands in for nmmo's Action.edges):
# action name -> {arg name: (argType, fixed idxs or None)}
ACTIONS = {
    "Move":   {"Direction": ("Fixed", [0, 1, 2, 3])},
    "Attack": {"Target":    ("Variable", None)},
}


def _round_up(x, m):
    return (x + m - 1) // m * m


# ----------------------------------------------------------------------------- kernel
def _fused_kernel(nf, obs_ref, vflat_ref, lens_ref, fixed_ref,
                  wk_ref, bk_ref, wv_ref, bv_ref,
                  fixed_out_ref, var_out_ref):
    """One fused call serving every (action, arg) head for one batch tile.

    obs_ref:       (TB, H)          f32   observations
    vflat_ref:     (TB*NV_pad, H)   bf16  Entity candidates, flattened in the wrapper
    lens_ref:      (TB, 1)          i32   valid-candidate count per batch row
    fixed_ref:     (NF_pad, H)      bf16  concatenated Fixed candidate tables (shared)
    wk/bk:         (H, H) f32 / (1, H) f32
    wv/bv:         (H, H) bf16 / (1, H) f32
    fixed_out_ref: (TB, NF_pad)     f32
    var_out_ref:   (TB, NV_pad)     f32
    """
    tb, h = obs_ref.shape
    nvp = var_out_ref.shape[1]
    nfp = fixed_out_ref.shape[1]

    # --- key projection, fused (tiny (tb,32)x(32,32) MXU matmul); 1/SCALE folded in.
    key = jnp.dot(obs_ref[...], wk_ref[...], preferred_element_type=jnp.float32)
    key = jnp.maximum(key + bk_ref[...], 0.0) * (1.0 / SCALE)          # (tb, h) f32

    wv = wv_ref[...]
    bv = bv_ref[...]

    # --- Fixed args: batch-shared candidates -> value projection once, then a plain
    #     2-D MXU matmul key @ val_f.T (lens is None for Fixed args).
    val_f = jnp.dot(fixed_ref[...], wv, preferred_element_type=jnp.float32)
    val_f = jnp.maximum(val_f + bv, 0.0)                               # (NF_pad, h)
    fixed_logits = lax.dot_general(
        key, val_f, (((1,), (1,)), ((), ())),
        preferred_element_type=jnp.float32)                            # (tb, NF_pad)
    # Zero padded columns (padding table rows would give key . relu(bv) != 0).
    col = lax.broadcasted_iota(jnp.int32, (tb, nfp), 1)
    fixed_out_ref[...] = jnp.where(col < nf, fixed_logits, 0.0)

    # --- Variable args: ONE flat MXU matmul for the value projection (single weight
    #     load), then a VPU multiply + lane reduce for the per-row dot with key
    #     (no q=1 batched MXU dot, which would reload weights per batch row).
    val = jnp.dot(vflat_ref[...], wv, preferred_element_type=jnp.float32)
    val = jnp.maximum(val + bv, 0.0)                                   # (tb*nvp, h) f32
    val3 = val.reshape(tb, nvp, h)      # leading-dim split; nvp % 8 == 0, minor dim kept
    dots = jnp.sum(key[:, None, :] * val3, axis=-1)                    # (tb, nvp) f32

    # torch semantics: x[n >= lens] = 0 (exact zero); also zeroes the N padding.
    idx = lax.broadcasted_iota(jnp.int32, (tb, nvp), 1)
    var_out_ref[...] = jnp.where(idx >= lens_ref[...], 0.0, dots)


# ---------------------------------------------------------------------------- sizing
def _vmem_limit_bytes():
    """Per-generation scoped-VMEM limit (explicit, so defaults never bite us)."""
    cap = 64 * 1024 * 1024                        # conservative (v7x physical per-TC)
    try:
        info = pltpu.get_tpu_info()
        cap = int(getattr(info, "vmem_capacity_bytes", cap) or cap)
    except Exception:
        pass
    # Use at most ~60% of physical VMEM, never above 64 MiB, never below 16 MiB.
    return max(16 * 1024 * 1024, min(int(cap * 0.6), 64 * 1024 * 1024))


def _step_vmem_bytes(tb, nv_pad, nf_pad, h):
    """Conservative per-grid-step VMEM footprint, INCLUDING lane-padded (H=32 -> 128)
    f32 intermediates and possible reshape / broadcast copies."""
    hp = _round_up(h, LANE)                       # lane-padded minor dim
    ent_in = tb * nv_pad * hp * 2 * 2             # bf16 candidate block, double-buffered
    val_f32 = tb * nv_pad * hp * 4 * 3            # projection + reshape copy + mul temp
    var_out = tb * nv_pad * 4 * 2
    fix_out = tb * nf_pad * 4 * 2
    obs_in = tb * hp * 4 * 2
    lens_in = tb * LANE * 4 * 2
    fixed_tab = nf_pad * hp * (2 * 2 + 4)         # bf16 table (x2) + f32 projection
    weights = 4 * hp * hp * 4
    return ent_in + val_f32 + var_out + fix_out + obs_in + lens_in + fixed_tab + weights


def _pick_batch_tile(b8, nv_pad, nf_pad, h, budget):
    """Largest sublane-aligned batch tile whose full footprint fits the budget,
    capped so the grid has >= 2 steps when possible (v7x has 2 TensorCores)."""
    tb = max(SUBLANE, min(512, b8) // SUBLANE * SUBLANE)
    while tb > SUBLANE and _step_vmem_bytes(tb, nv_pad, nf_pad, h) > budget:
        tb -= SUBLANE
    if b8 >= 2 * SUBLANE:
        tb = min(tb, max(SUBLANE, (b8 // 2) // SUBLANE * SUBLANE))
    return int(max(tb, SUBLANE))


# ---------------------------------------------------------------------------- wrapper
def _fused_logits(obs_p, vflat_bf, lens_p, fixed_bf, wk, bk, wv_bf, bv,
                  tb, nf, nf_pad, nv_pad, vmem_limit):
    bp, h = obs_p.shape
    kernel = functools.partial(_fused_kernel, nf)
    return pl.pallas_call(
        kernel,
        out_shape=(jax.ShapeDtypeStruct((bp, nf_pad), jnp.float32),
                   jax.ShapeDtypeStruct((bp, nv_pad), jnp.float32)),
        grid=(bp // tb,),
        in_specs=[
            pl.BlockSpec((tb, h), lambda i: (i, 0)),              # obs
            pl.BlockSpec((tb * nv_pad, h), lambda i: (i, 0)),     # flattened Entity cands
            pl.BlockSpec((tb, 1), lambda i: (i, 0)),              # lens
            pl.BlockSpec((nf_pad, h), lambda i: (0, 0)),          # shared Fixed candidates
            pl.BlockSpec((h, h), lambda i: (0, 0)),               # Wk
            pl.BlockSpec((1, h), lambda i: (0, 0)),               # bk
            pl.BlockSpec((h, h), lambda i: (0, 0)),               # Wv
            pl.BlockSpec((1, h), lambda i: (0, 0)),               # bv
        ],
        out_specs=(pl.BlockSpec((tb, nf_pad), lambda i: (i, 0)),
                   pl.BlockSpec((tb, nv_pad), lambda i: (i, 0))),
        compiler_params=pltpu.CompilerParams(
            dimension_semantics=("parallel",),
            vmem_limit_bytes=int(vmem_limit)),
    )(obs_p, vflat_bf, lens_p, fixed_bf, wk, bk, wv_bf, bv)


def init_output_params(key, h=HIDDEN, action_n=ACTION_N):
    k_emb, k_wk, k_bk, k_wv, k_bv = jax.random.split(key, 5)
    s = 1.0 / jnp.sqrt(h)
    return {
        "arg_emb": jax.random.normal(k_emb, (action_n, h), jnp.float32),
        "wk": jax.random.uniform(k_wk, (h, h), jnp.float32, -s, s),
        "bk": jax.random.uniform(k_bk, (1, h), jnp.float32, -s, s),
        "wv": jax.random.uniform(k_wv, (h, h), jnp.float32, -s, s),
        "bv": jax.random.uniform(k_bv, (1, h), jnp.float32, -s, s),
    }


def output_forward(params, obs, lookup):
    """Mirror of Output.forward: every (action, arg) head served by ONE fused Pallas
    call (key projection fused in; Fixed tables batch-shared; Variable logits shared)."""
    obs = jnp.asarray(obs, jnp.float32)
    b, h = obs.shape
    ent = jnp.asarray(lookup["Entity"])                       # (B, N_ent, H)
    lens = jnp.asarray(lookup["N"], jnp.int32).reshape(b)     # (B,)
    n_ent = ent.shape[1]

    # gather & concatenate the Fixed candidate tables (batch independent)
    fixed_slices, tables, off = {}, [], 0
    for atn, args in ACTIONS.items():
        for arg, (arg_type, idxs) in args.items():
            if arg_type == "Fixed":
                tables.append(params["arg_emb"][jnp.asarray(idxs)])   # (n_fixed, H)
                fixed_slices[(atn, arg)] = (off, len(idxs))
                off += len(idxs)
    nf = max(off, 1)
    fixed_cat = (jnp.concatenate(tables, axis=0) if tables
                 else jnp.zeros((1, h), jnp.float32))

    # padding: lane-dense (multiple-of-128) candidate axes, sublane-aligned batch tiles
    nf_pad = _round_up(nf, LANE)
    nv_pad = _round_up(n_ent, LANE)
    b8 = _round_up(b, SUBLANE)

    vmem_limit = _vmem_limit_bytes()
    budget = int(vmem_limit * 0.85)
    tb = _pick_batch_tile(b8, nv_pad, nf_pad, h, budget)
    bp = _round_up(b8, tb)

    obs_p = jnp.zeros((bp, h), jnp.float32).at[:b].set(obs)
    lens_p = jnp.zeros((bp, 1), jnp.int32).at[:b, 0].set(lens)
    fixed_bf = (jnp.zeros((nf_pad, h), jnp.bfloat16)
                .at[:fixed_cat.shape[0]].set(fixed_cat.astype(jnp.bfloat16)))
    # cast BEFORE padding (no padded f32 copy of the largest array in HBM), then
    # flatten (B, N, H) -> (B*N, H) wrapper-side (contiguous bf16 reshape, free-ish)
    ent_bf = (jnp.zeros((bp, nv_pad, h), jnp.bfloat16)
              .at[:b, :n_ent].set(ent.astype(jnp.bfloat16)))
    vflat_bf = ent_bf.reshape(bp * nv_pad, h)
    wv_bf = params["wv"].astype(jnp.bfloat16)

    fixed_out, var_out = _fused_logits(obs_p, vflat_bf, lens_p, fixed_bf,
                                       params["wk"], params["bk"], wv_bf, params["bv"],
                                       tb, nf, nf_pad, nv_pad, vmem_limit)

    var_logits = var_out[:b, :n_ent]   # shared by every Variable arg (same cands/lens)
    rets = {}
    for atn, args in ACTIONS.items():
        rets[atn] = {}
        for arg, (arg_type, idxs) in args.items():
            if arg_type == "Fixed":
                start, n = fixed_slices[(atn, arg)]
                rets[atn][arg] = fixed_out[:b, start:start + n]
            else:
                rets[atn][arg] = var_logits
    return rets


# ------------------------------------------------------------------- pure-JAX reference
def _reference_forward(params, obs, lookup):
    def dot_relu(stim, cands, lens):
        key = jax.nn.relu(stim @ params["wk"] + params["bk"])        # (B, H)
        val = jax.nn.relu(cands @ params["wv"] + params["bv"])       # (B, N, H)
        x = jnp.einsum('bh,bnh->bn', key, val) / SCALE
        if lens is not None:
            idx = jnp.arange(x.shape[-1])[None, :]
            x = jnp.where(idx >= lens[:, None], 0.0, x)
        return x

    rets = {}
    for atn, args in ACTIONS.items():
        rets[atn] = {}
        for arg, (arg_type, idxs) in args.items():
            if arg_type == "Fixed":
                cands = params["arg_emb"][jnp.asarray(idxs)]
                cands = jnp.broadcast_to(cands[None], (obs.shape[0],) + cands.shape)
                rets[atn][arg] = dot_relu(obs, cands, None)
            else:
                rets[atn][arg] = dot_relu(obs, lookup["Entity"], lookup["N"])
    return rets


if __name__ == "__main__":
    B, N_ENT = 2, 8
    root = jax.random.PRNGKey(0)
    k_params, k_obs, k_ent = jax.random.split(root, 3)

    params = init_output_params(k_params)
    obs = jax.random.normal(k_obs, (B, HIDDEN), jnp.float32)
    lookup = {
        "Entity": jax.random.normal(k_ent, (B, N_ENT, HIDDEN), jnp.float32),
        "N": jnp.array([5, 8], dtype=jnp.int32),    # variable #entities per batch row
    }

    rets = output_forward(params, obs, lookup)
    jax.block_until_ready(rets)

    # shapes + torch write-zero masking semantics
    assert rets["Move"]["Direction"].shape == (B, 4)
    assert rets["Attack"]["Target"].shape == (B, N_ENT)
    assert bool(jnp.all(rets["Attack"]["Target"][0, 5:] == 0.0))

    # numerics vs. a pure-JAX f32 reference (kernel ships cands/Wv as bf16)
    ref = _reference_forward(params, obs, lookup)
    for atn in ACTIONS:
        for arg in ACTIONS[atn]:
            assert bool(jnp.allclose(rets[atn][arg], ref[atn][arg],
                                     rtol=1e-1, atol=2e-3)), (atn, arg)

    print("KERNEL_OK")
</pallas_src>

<mosaic_0001>
module attributes {stable_mosaic.version = 11 : i64} {
  func.func @_fused_kernel(%arg0: i32, %arg1: memref<8x32xf32, #tpu.memory_space<vmem>>, %arg2: memref<1024x32xbf16, #tpu.memory_space<vmem>>, %arg3: memref<8x1xi32, #tpu.memory_space<vmem>>, %arg4: memref<128x32xbf16, #tpu.memory_space<vmem>>, %arg5: memref<32x32xf32, #tpu.memory_space<vmem>>, %arg6: memref<1x32xf32, #tpu.memory_space<vmem>>, %arg7: memref<32x32xbf16, #tpu.memory_space<vmem>>, %arg8: memref<1x32xf32, #tpu.memory_space<vmem>>, %arg9: memref<8x128xf32, #tpu.memory_space<vmem>>, %arg10: memref<8x128xf32, #tpu.memory_space<vmem>>) attributes {dimension_semantics = [#tpu.dimension_semantics<parallel>], iteration_bounds = array<i64: 1>, scalar_prefetch = 0 : i64, scratch_operands = 0 : i64, tpu.core_type = #tpu.core_type<tc>, window_params = [{transform_indices = @transform_0, window_bounds = array<i64: 8, 32>}, {transform_indices = @transform_1, window_bounds = array<i64: 1024, 32>}, {transform_indices = @transform_2, window_bounds = array<i64: 8, 1>}, {pipeline_mode = #tpu.pipeline_mode<synchronous>, transform_indices = @transform_3, window_bounds = array<i64: 128, 32>}, {pipeline_mode = #tpu.pipeline_mode<synchronous>, transform_indices = @transform_4, window_bounds = array<i64: 32, 32>}, {pipeline_mode = #tpu.pipeline_mode<synchronous>, transform_indices = @transform_5, window_bounds = array<i64: 1, 32>}, {pipeline_mode = #tpu.pipeline_mode<synchronous>, transform_indices = @transform_6, window_bounds = array<i64: 32, 32>}, {pipeline_mode = #tpu.pipeline_mode<synchronous>, transform_indices = @transform_7, window_bounds = array<i64: 1, 32>}, {transform_indices = @transform_8, window_bounds = array<i64: 8, 128>}, {transform_indices = @transform_9, window_bounds = array<i64: 8, 128>}]} {
    %c0 = arith.constant 0 : index
    %c0_0 = arith.constant 0 : index
    %0 = vector.load %arg1[%c0, %c0_0] : memref<8x32xf32, #tpu.memory_space<vmem>>, vector<8x32xf32>
    %c0_1 = arith.constant 0 : index
    %c0_2 = arith.constant 0 : index
    %1 = vector.load %arg5[%c0_1, %c0_2] : memref<32x32xf32, #tpu.memory_space<vmem>>, vector<32x32xf32>
    %cst = arith.constant dense<0.000000e+00> : vector<8x32xf32>
    %2 = tpu.matmul %0, %1, %cst {dimension_numbers = #tpu.dot_dimension_numbers<[1], [0], [0], [1], [0, 0, 1, 1], [], []>} : vector<8x32xf32>, vector<32x32xf32>, vector<8x32xf32> -> vector<8x32xf32>
    %c0_3 = arith.constant 0 : index
    %c0_4 = arith.constant 0 : index
    %3 = vector.load %arg6[%c0_3, %c0_4] : memref<1x32xf32, #tpu.memory_space<vmem>>, vector<1x32xf32>
    %4 = vector.broadcast %3 : vector<1x32xf32> to vector<8x32xf32>
    %5 = arith.addf %2, %4 : vector<8x32xf32>
    %cst_5 = arith.constant 0.000000e+00 : f32
    %6 = vector.broadcast %cst_5 : f32 to vector<8x32xf32>
    %7 = arith.maximumf %5, %6 : vector<8x32xf32>
    %cst_6 = arith.constant 7.812500e-03 : f32
    %8 = vector.broadcast %cst_6 : f32 to vector<8x32xf32>
    %9 = arith.mulf %7, %8 : vector<8x32xf32>
    %c0_7 = arith.constant 0 : index
    %c0_8 = arith.constant 0 : index
    %10 = vector.load %arg7[%c0_7, %c0_8] : memref<32x32xbf16, #tpu.memory_space<vmem>>, vector<32x32xbf16>
    %c0_9 = arith.constant 0 : index
    %c0_10 = arith.constant 0 : index
    %11 = vector.load %arg8[%c0_9, %c0_10] : memref<1x32xf32, #tpu.memory_space<vmem>>, vector<1x32xf32>
    %c0_11 = arith.constant 0 : index
    %c0_12 = arith.constant 0 : index
    %12 = vector.load %arg4[%c0_11, %c0_12] : memref<128x32xbf16, #tpu.memory_space<vmem>>, vector<128x32xbf16>
    %cst_13 = arith.constant dense<0.000000e+00> : vector<128x32xf32>
    %13 = tpu.matmul %12, %10, %cst_13 {dimension_numbers = #tpu.dot_dimension_numbers<[1], [0], [0], [1], [0, 0, 1, 1], [], []>} : vector<128x32xbf16>, vector<32x32xbf16>, vector<128x32xf32> -> vector<128x32xf32>
    %14 = vector.broadcast %11 : vector<1x32xf32> to vector<128x32xf32>
    %15 = arith.addf %13, %14 : vector<128x32xf32>
    %cst_14 = arith.constant 0.000000e+00 : f32
    %16 = vector.broadcast %cst_14 : f32 to vector<128x32xf32>
    %17 = arith.maximumf %15, %16 : vector<128x32xf32>
    %cst_15 = arith.constant dense<0.000000e+00> : vector<8x128xf32>
    %18 = tpu.matmul %9, %17, %cst_15 {dimension_numbers = #tpu.dot_dimension_numbers<[1], [1], [0], [0], [0, 0, 1, 0], [], []>} : vector<8x32xf32>, vector<128x32xf32>, vector<8x128xf32> -> vector<8x128xf32>
    %19 = tpu.iota {dimensions = array<i32: 1>} : vector<8x128xi32>
    %c4_i32 = arith.constant 4 : i32
    %20 = vector.broadcast %c4_i32 : i32 to vector<8x128xi32>
    %21 = arith.cmpi slt, %19, %20 : vector<8x128xi32>
    %cst_16 = arith.constant 0.000000e+00 : f32
    %22 = vector.broadcast %cst_16 : f32 to vector<8x128xf32>
    %23 = arith.select %21, %18, %22 : vector<8x128xi1>, vector<8x128xf32>
    %c0_17 = arith.constant 0 : index
    %c0_18 = arith.constant 0 : index
    %24 = vector.load %arg9[%c0_17, %c0_18] : memref<8x128xf32, #tpu.memory_space<vmem>>, vector<8x128xf32>
    tpu.vector_store %arg9[%c0_17, %c0_18], %23 {strides = array<i32>} : memref<8x128xf32, #tpu.memory_space<vmem>>, vector<8x128xf32>,
    %c0_19 = arith.constant 0 : index
    %c0_20 = arith.constant 0 : index
    %25 = vector.load %arg2[%c0_19, %c0_20] : memref<1024x32xbf16, #tpu.memory_space<vmem>>, vector<1024x32xbf16>
    %cst_21 = arith.constant dense<0.000000e+00> : vector<1024x32xf32>
    %26 = tpu.matmul %25, %10, %cst_21 {dimension_numbers = #tpu.dot_dimension_numbers<[1], [0], [0], [1], [0, 0, 1, 1], [], []>} : vector<1024x32xbf16>, vector<32x32xbf16>, vector<1024x32xf32> -> vector<1024x32xf32>
    %27 = vector.broadcast %11 : vector<1x32xf32> to vector<1024x32xf32>
    %28 = arith.addf %26, %27 : vector<1024x32xf32>
    %cst_22 = arith.constant 0.000000e+00 : f32
    %29 = vector.broadcast %cst_22 : f32 to vector<1024x32xf32>
    %30 = arith.maximumf %28, %29 : vector<1024x32xf32>
    %31 = vector.shape_cast %30 : vector<1024x32xf32> to vector<8x128x32xf32>
    %32 = vector.shape_cast %9 : vector<8x32xf32> to vector<8x1x32xf32>
    %33 = vector.broadcast %32 : vector<8x1x32xf32> to vector<8x128x32xf32>
    %34 = arith.mulf %33, %31 : vector<8x128x32xf32>
    %cst_23 = arith.constant dense<0.000000e+00> : vector<8x128xf32>
    %35 = vector.multi_reduction <add>, %34, %cst_23 [2] : vector<8x128x32xf32> to vector<8x128xf32>
    %36 = tpu.iota {dimensions = array<i32: 1>} : vector<8x128xi32>
    %c0_24 = arith.constant 0 : index
    %c0_25 = arith.constant 0 : index
    %37 = vector.load %arg3[%c0_24, %c0_25] : memref<8x1xi32, #tpu.memory_space<vmem>>, vector<8x1xi32>
    %38 = vector.broadcast %37 : vector<8x1xi32> to vector<8x128xi32>
    %39 = arith.cmpi sge, %36, %38 : vector<8x128xi32>
    %cst_26 = arith.constant 0.000000e+00 : f32
    %40 = vector.broadcast %cst_26 : f32 to vector<8x128xf32>
    %41 = arith.select %39, %40, %35 : vector<8x128xi1>, vector<8x128xf32>
    %c0_27 = arith.constant 0 : index
    %c0_28 = arith.constant 0 : index
    %42 = vector.load %arg10[%c0_27, %c0_28] : memref<8x128xf32, #tpu.memory_space<vmem>>, vector<8x128xf32>
    tpu.vector_store %arg10[%c0_27, %c0_28], %41 {strides = array<i32>} : memref<8x128xf32, #tpu.memory_space<vmem>>, vector<8x128xf32>,
    return
  }
  func.func @transform_0(%arg0: i32) -> (i32, i32) {
    %c0_i32 = arith.constant 0 : i32
    %c0_i32_0 = arith.constant 0 : i32
    return %arg0, %c0_i32 : i32, i32
  }
  func.func @transform_1(%arg0: i32) -> (i32, i32) {
    %c0_i32 = arith.constant 0 : i32
    %c0_i32_0 = arith.constant 0 : i32
    return %arg0, %c0_i32 : i32, i32
  }
  func.func @transform_2(%arg0: i32) -> (i32, i32) {
    %c0_i32 = arith.constant 0 : i32
    %c0_i32_0 = arith.constant 0 : i32
    return %arg0, %c0_i32 : i32, i32
  }
  func.func @transform_3(%arg0: i32) -> (i32, i32) {
    %c0_i32 = arith.constant 0 : i32
    %c0_i32_0 = arith.constant 0 : i32
    %c0_i32_1 = arith.constant 0 : i32
    return %c0_i32, %c0_i32_0 : i32, i32
  }
  func.func @transform_4(%arg0: i32) -> (i32, i32) {
    %c0_i32 = arith.constant 0 : i32
    %c0_i32_0 = arith.constant 0 : i32
    %c0_i32_1 = arith.constant 0 : i32
    return %c0_i32, %c0_i32_0 : i32, i32
  }
  func.func @transform_5(%arg0: i32) -> (i32, i32) {
    %c0_i32 = arith.constant 0 : i32
    %c0_i32_0 = arith.constant 0 : i32
    %c0_i32_1 = arith.constant 0 : i32
    return %c0_i32, %c0_i32_0 : i32, i32
  }
  func.func @transform_6(%arg0: i32) -> (i32, i32) {
    %c0_i32 = arith.constant 0 : i32
    %c0_i32_0 = arith.constant 0 : i32
    %c0_i32_1 = arith.constant 0 : i32
    return %c0_i32, %c0_i32_0 : i32, i32
  }
  func.func @transform_7(%arg0: i32) -> (i32, i32) {
    %c0_i32 = arith.constant 0 : i32
    %c0_i32_0 = arith.constant 0 : i32
    %c0_i32_1 = arith.constant 0 : i32
    return %c0_i32, %c0_i32_0 : i32, i32
  }
  func.func @transform_8(%arg0: i32) -> (i32, i32) {
    %c0_i32 = arith.constant 0 : i32
    %c0_i32_0 = arith.constant 0 : i32
    return %arg0, %c0_i32 : i32, i32
  }
  func.func @transform_9(%arg0: i32) -> (i32, i32) {
    %c0_i32 = arith.constant 0 : i32
    %c0_i32_0 = arith.constant 0 : i32
    return %arg0, %c0_i32 : i32, i32
  }
}

</mosaic_0001>

<bundles_post_ra>
// kernel: tpu_custom_call.1
= control target key start
LH: loop header
LB: loop body
LE: loop exit
PB: predicated region body
PF: predicated region fallthrough
CT: control target
= control target key end

     0   :  { %15 = vsyncpa [#allocation3], 0  ;;  %vm46_vm0 = vcmask 261120   ;;  %v3854_v3 = vmov 0.0|0.0   ;;  %vm3855_vm1 = vmmov 0   ;;  %v3856_v5 = vmov 0.0   ;;  %s5230_s0 = inlined_call_operand.vmem [shape: f32[8,32], index: 0, kind: input, shape index: {}]   ;;  %s5231_s1 = inlined_call_operand.vmem [shape: bf16[1024,32], index: 1, kind: input, shape index: {}]   ;;  %s5232_s2 = inlined_call_operand.vmem [shape: s32[8,1], index: 2, kind: input, shape index: {}]   ;;  %s5233_s3 = inlined_call_operand.vmem [shape: bf16[128,32], index: 3, kind: input, shape index: {}]   ;;  %s5234_s4 = inlined_call_operand.vmem [shape: f32[32,32], index: 4, kind: input, shape index: {}]   ;;  %s5235_s5 = inlined_call_operand.vmem [shape: f32[1,32], index: 5, kind: input, shape index: {}]   ;;  %s5236_s6 = inlined_call_operand.vmem [shape: bf16[32,32], index: 6, kind: input, shape index: {}]   ;;  %s5237_s7 = inlined_call_operand.vmem [shape: f32[1,32], index: 7, kind: input, shape index: {}]   ;;  %s5238_s8 = inlined_call_operand.hbm [shape: f32[8,128], index: 8, kind: output, shape index: {0}]   ;;  %s5239_s9 = inlined_call_operand.hbm [shape: f32[8,128], index: 9, kind: output, shape index: {1}]  }
   0x1   :  { %v3914_v0 = vld [vmem:[%s5236_s6] sm:$0xff]   ;;  %v3919_v1 = vld [vmem:[%s5236_s6 + $0x8] sm:$0xff]   ;;  %3680 = vmatprep.subr.bf16.mxu0 %v3854_v3  ;;  %3490 = vmatprep.mubr.msk.f32.mxu0 %vm3855_vm1, %v3856_v5  ;;  %v3734_v8 = vld [vmem:[%s5233_s3 + $0x10] sm:$0xff]  }
   0x2   :  { %3493 = vmatprep.subr.bf16.mxu1 %v3914_v0  ;;  %v3732_v2 = vld [vmem:[%s5233_s3] sm:$0xff]   ;;  %v3733_v4 = vld [vmem:[%s5233_s3 + $0x8] sm:$0xff]   ;;  %v37_v10 = vld [vmem:[%s5234_s4 + $0x10] sm:$0xff] }
   0x3   :  { %3494 = vmatpush3.bf16.msra.mxu1 %v3914_v0  ;;  %3497 = vmatprep.mubr.msk.bf16.mxu1 %vm46_vm0, %v3732_v2  ;;  %v35_v6 = vld [vmem:[%s5234_s4] sm:$0xff]  ;;  %v36_v7 = vld [vmem:[%s5234_s4 + $0x8] sm:$0xff]  ;;  %v38_v11 = vld [vmem:[%s5234_s4 + $0x18] sm:$0xff] }
   0x4   :  { %3495 = vmatprep.subr.bf16.mxu1 %v3919_v1  ;;  %v3681_v9 = vpack.c.bf16 %v36_v7, %v35_v6  ;;  %v3684_v12 = vpack.c.bf16 %v38_v11, %v37_v10  ;;  %v34_v13 = vld [vmem:[%s5230_s0] sm:$0xff]  ;;  %v3735_v14 = vld [vmem:[%s5233_s3 + $0x18] sm:$0xff]   ;;  %v3737_v16 = vld [vmem:[%s5233_s3 + $0x28] sm:$0xff]  }
   0x5   :  { %v3736_v15 = vld [vmem:[%s5233_s3 + $0x20] sm:$0xff]   ;;  %v3738_v17 = vld [vmem:[%s5233_s3 + $0x30] sm:$0xff]   ;;  %v3739_v18 = vld [vmem:[%s5233_s3 + $0x38] sm:$0xff]  }
   0x6   :  { %3682 = vmatpush3.bf16.msra.mxu0 %v3681_v9  ;;  %v3740_v19 = vld [vmem:[%s5231_s1 + $0xd0] sm:$0xff]   ;;  %v3741_v20 = vld [vmem:[%s5231_s1 + $0xd8] sm:$0xff]   ;;  %v3742_v21 = vld [vmem:[%s5231_s1 + $0xe0] sm:$0xff]  }
   0x7   :  { %3496 = vmatpush3.bf16.msra.mxu1 %v3919_v1  ;;  %3683 = vmatprep.subr.bf16.mxu0 %v3854_v3  ;;  %v3743_v22 = vld [vmem:[%s5231_s1 + $0xe8] sm:$0xff]   ;;  %v3744_v23 = vld [vmem:[%s5231_s1 + $0xf0] sm:$0xff]   ;;  %v3745_v24 = vld [vmem:[%s5231_s1 + $0xf8] sm:$0xff]  }
   0x8   :  { %3718 = vmatprep.subr.bf16.mxu1 %v3914_v0  ;;  %v3746_v25 = vld [vmem:[%s5231_s1 + $0x100] sm:$0xff]   ;;  %v3747_v26 = vld [vmem:[%s5231_s1 + $0x108] sm:$0xff]   ;;  %v3748_v27 = vld [vmem:[%s5231_s1 + $0x110] sm:$0xff]  }
   0xa   :  { %3498 = vmatmul.mubr.msk.bf16.vlgmr.msra.gmra.mrb[0].mxu1 %vm46_vm0, %v3733_v4  ;;  %3685 = vmatpush3.bf16.msra.mxu0 %v3684_v12 }
   0xb   :  { %3501 = vmatprep.mubr.msk.bf16.mxu1 %vm46_vm0, %v3734_v8  ;;  %3720 = vmatpush3.bf16.msra.mxu1 %v3914_v0 }
   0xc   :  { %3719 = vmatprep.subr.bf16.mxu1 %v3919_v1  ;;  %3686 = vmatprep.subr.bf16.mxu0 %v3854_v3 }
   0xd   :  { %3491 = vmatmul.mubr.msk.f32.vlgmr.msra.gmra.mrb[0].mxu0 %vm46_vm0, %v34_v13 }
   0xe   :  { %3545 = vmatprep.mubr.msk.f32.mxu0 %vm3855_vm1, %v3856_v5 }
   0xf   :  { %3721 = vmatpush3.bf16.msra.mxu1 %v3919_v1 }
  0x12   :  { %3502 = vmatmul.mubr.msk.bf16.gmra.mrb[4].mxu1 %vm46_vm0, %v3735_v14 }
  0x13   :  { %3505 = vmatprep.mubr.msk.bf16.mxu1 %vm46_vm0, %v3736_v15 }
  0x1a   :  { %3506 = vmatmul.mubr.msk.bf16.gmra.mrb[8].mxu1 %vm46_vm0, %v3737_v16 }
  0x1b   :  { %3509 = vmatprep.mubr.msk.bf16.mxu1 %vm46_vm0, %v3738_v17 }
  0x22   :  { %3510 = vmatmul.mubr.msk.bf16.gmra.mrb[12].mxu1 %vm46_vm0, %v3739_v18 }
  0x23   :  { %3604 = vmatprep.mubr.msk.bf16.mxu1 %vm46_vm0, %v3740_v19 }
  0x2a   :  { %3605 = vmatmul.mubr.msk.bf16.vlgmr.msra.gmra.mrb[16].mxu1 %vm46_vm0, %v3741_v20 }
  0x2b   :  { %3608 = vmatprep.mubr.msk.bf16.mxu1 %vm46_vm0, %v3742_v21 }
  0x32   :  { %3609 = vmatmul.mubr.msk.bf16.gmra.mrb[20].mxu1 %vm46_vm0, %v3743_v22 }
  0x33   :  { %3612 = vmatprep.mubr.msk.bf16.mxu1 %vm46_vm0, %v3744_v23 }
  0x3a   :  { %3613 = vmatmul.mubr.msk.bf16.gmra.mrb[24].mxu1 %vm46_vm0, %v3745_v24 }
  0x3b   :  { %3616 = vmatprep.mubr.msk.bf16.mxu1 %vm46_vm0, %v3746_v25 }
  0x42   :  { %3617 = vmatmul.mubr.msk.bf16.gmra.mrb[28].mxu1 %vm46_vm0, %v3747_v26 }
  0x43   :  { %3620 = vmatprep.mubr.msk.bf16.mxu1 %vm46_vm0, %v3748_v27 }
  0x44   :  { %16 = vsyncpa [#allocation5], 0  ;;  %v3749_v28 = vld [vmem:[%s5231_s1 + $0x118] sm:$0xff]   ;;  %v3750_v29 = vld [vmem:[%s5231_s1 + $0x120] sm:$0xff]   ;;  %v459_v61 = vlaneseq  ;;  %v3857_v62 = vmov 1966171168  }
  0x45   :  { %v3751_v30 = vld [vmem:[%s5231_s1 + $0x128] sm:$0xff]   ;;  %v3752_v31 = vld [vmem:[%s5231_s1 + $0x130] sm:$0xff]   ;;  %v3753_v32 = vld [vmem:[%s5231_s1 + $0x138] sm:$0xff]   ;;  %v1779_v63 = vunpack.c.l.s4 %v3857_v62  ;;  %vm2520_vm3 = vcmask 130112   ;;  %vm2527_vm4 = vcmask 195712   ;;  %vm2534_vm5 = vcmask 261312  }
  0x46   :  { %v3754_v33 = vld [vmem:[%s5231_s1 + $0x140] sm:$0xff]   ;;  %v3755_v34 = vld [vmem:[%s5231_s1 + $0x148] sm:$0xff]   ;;  %v3756_v35 = vld [vmem:[%s5231_s1 + $0x150] sm:$0xff]   ;;  %v4147_v12 = vshrl.u32 %v459_v61, 7  ;;  %vm2541_vm6 = vcmask 326912   ;;  %vm2548_vm7 = vcmask 392512  }
  0x47   :  { %v3757_v36 = vld [vmem:[%s5231_s1 + $0x158] sm:$0xff]   ;;  %v3758_v37 = vld [vmem:[%s5231_s1 + $0x160] sm:$0xff]   ;;  %v3759_v38 = vld [vmem:[%s5231_s1 + $0x168] sm:$0xff]   ;;  %v1780_v11 = vunpack.c.0.s8 %v1779_v63  ;;  %vm2555_vm8 = vcmask 458112   ;;  %vm2562_vm9 = vcmask 523712   ;;  %vm2569_vm10 = vcmask 589312  }
  0x48   :  { %v3760_v39 = vld [vmem:[%s5231_s1 + $0x170] sm:$0xff]   ;;  %v3761_v40 = vld [vmem:[%s5231_s1 + $0x178] sm:$0xff]   ;;  %v3762_v41 = vld [vmem:[%s5231_s1 + $0x180] sm:$0xff]   ;;  %vm2576_vm11 = vcmask 654912   ;;  %vm2583_vm12 = vcmask 720512   ;;  %vm2590_vm13 = vcmask 786112  }
  0x49   :  { %v3763_v42 = vld [vmem:[%s5231_s1 + $0x188] sm:$0xff]   ;;  %v3764_v43 = vld [vmem:[%s5231_s1 + $0x190] sm:$0xff]   ;;  %v3765_v44 = vld [vmem:[%s5231_s1 + $0x198] sm:$0xff]   ;;  %v1783_v25 = vsub.s32 %v1780_v11, %v4147_v12  ;;  %vm2597_vm14 = vcmask 851712   ;;  %vm2604_vm15 = vcmask 917312   ;;  %s3859_s21 = smov [#allocation2]  }
  0x4a   :  { %3621 = vmatmul.mubr.msk.bf16.gmra.mrb[32].mxu1 %vm46_vm0, %v3749_v28  ;;  %v3766_v45 = vld [vmem:[%s5231_s1 + $0x1a0] sm:$0xff]   ;;  %v3767_v46 = vld [vmem:[%s5231_s1 + $0x1a8] sm:$0xff]   ;;  %v3768_v47 = vld [vmem:[%s5231_s1 + $0x1b0] sm:$0xff]   ;;  %s3196_s22 = sshll.u32 %s3859_s21, 4  ;;  %s3197_s22 = int_to_ptr.vmem [resolvable:$true] %s3196_s22 }
  0x4b   :  { %3624 = vmatprep.mubr.msk.bf16.mxu1 %vm46_vm0, %v3750_v29  ;;  %v3769_v48 = vld [vmem:[%s5231_s1 + $0x1b8] sm:$0xff]   ;;  %v3770_v49 = vld [vmem:[%s5231_s1 + $0x1c0] sm:$0xff]   ;;  %v3771_v50 = vld [vmem:[%s5231_s1 + $0x1c8] sm:$0xff]   ;;  %s3806_s23 = scalar_lea.vmem %s3197_s22, 128  ;;  %p3811_p1 = scmp.lt.s32.totalorder %s3197_s22, %s3197_s22 }
  0x4c   :  { %v3772_v51 = vld [vmem:[%s5231_s1 + $0x1d0] sm:$0xff]   ;;  %v3773_v52 = vld [vmem:[%s5231_s1 + $0x1d8] sm:$0xff]   ;;  %v3774_v53 = vld [vmem:[%s5231_s1 + $0x1e0] sm:$0xff]   ;;  %p3807_p0 = scmp.ne.s32.totalorder %s3197_s22, %s3806_s23  ;;  %p3812_p2 = scmp.lt.s32.totalorder %s3806_s23, %s3806_s23 }
  0x4d   :  { %v3775_v54 = vld [vmem:[%s5231_s1 + $0x1e8] sm:$0xff]   ;;  %v3776_v55 = vld [vmem:[%s5231_s1 + $0x1f0] sm:$0xff]   ;;  %v3777_v56 = vld [vmem:[%s5231_s1 + $0x1f8] sm:$0xff]  }
  0x4e   :  { %v4137_v57 = vld [vmem:[%s5237_s7] ss:$0 sm:$0xff]  ;;  %vm4151_vm2 = vmpackc.low %vm46_vm0, %vm46_vm0  ;;  %p3813_p3 = por %p3812_p2, %p3811_p1 }
  0x4f   :  { %v3218_v8 = vld [vmem:[%s5235_s5] ss:$0 sm:$0xff] }
  0x50   :  { %p3814_p4 = pnand %p3813_p3, %p3807_p0 }
  0x52   :  { %3625 = vmatmul.mubr.msk.bf16.gmra.mrb[36].mxu1 %vm46_vm0, %v3751_v30 }
  0x53   :  { %3628 = vmatprep.mubr.msk.bf16.mxu1 %vm46_vm0, %v3752_v31 }
  0x5a   :  { %3629 = vmatmul.mubr.msk.bf16.gmra.mrb[40].mxu1 %vm46_vm0, %v3753_v32 }
  0x5b   :  { %3632 = vmatprep.mubr.msk.bf16.mxu1 %vm46_vm0, %v3754_v33 }
  0x62   :  { %3633 = vmatmul.mubr.msk.bf16.gmra.mrb[44].mxu1 %vm46_vm0, %v3755_v34 }
  0x63   :  { %3636 = vmatprep.mubr.msk.bf16.mxu1 %vm46_vm0, %v3756_v35 }
  0x6a   :  { %3637 = vmatmul.mubr.msk.bf16.gmra.mrb[48].mxu1 %vm46_vm0, %v3757_v36 }
  0x6b   :  { %3640 = vmatprep.mubr.msk.bf16.mxu1 %vm46_vm0, %v3758_v37 }
  0x72   :  { %3641 = vmatmul.mubr.msk.bf16.gmra.mrb[52].mxu1 %vm46_vm0, %v3759_v38 }
  0x73   :  { %3644 = vmatprep.mubr.msk.bf16.mxu1 %vm46_vm0, %v3760_v39 }
  0x7a   :  { %3645 = vmatmul.mubr.msk.bf16.gmra.mrb[56].mxu1 %vm46_vm0, %v3761_v40 }
  0x7b   :  { %3648 = vmatprep.mubr.msk.bf16.mxu1 %vm46_vm0, %v3762_v41 }
  0x82   :  { %3649 = vmatmul.mubr.msk.bf16.gmra.mrb[60].mxu1 %vm46_vm0, %v3763_v42 }
  0x83   :  { %3652 = vmatprep.mubr.msk.bf16.mxu1 %vm46_vm0, %v3764_v43  ;;  %v4169_v43 = vsub.s32 0, %v4147_v12 }
  0x8a   :  { %3653 = vmatmul.mubr.msk.bf16.gmra.mrb[64].mxu1 %vm46_vm0, %v3765_v44 }
  0x8b   :  { %3656 = vmatprep.mubr.msk.bf16.mxu1 %vm46_vm0, %v3766_v45 }
  0x92   :  { %3657 = vmatmul.mubr.msk.bf16.gmra.mrb[68].mxu1 %vm46_vm0, %v3767_v46 }
  0x93   :  { %3660 = vmatprep.mubr.msk.bf16.mxu1 %vm46_vm0, %v3768_v47 }
  0x9a   :  { %3661 = vmatmul.mubr.msk.bf16.gmra.mrb[72].mxu1 %vm46_vm0, %v3769_v48 }
  0x9b   :  { %3664 = vmatprep.mubr.msk.bf16.mxu1 %vm46_vm0, %v3770_v49 }
  0xa2   :  { %3665 = vmatmul.mubr.msk.bf16.gmra.mrb[76].mxu1 %vm46_vm0, %v3771_v50 }
  0xa3   :  { %3668 = vmatprep.mubr.msk.bf16.mxu1 %vm46_vm0, %v3772_v51 }
  0xaa   :  { %3669 = vmatmul.mubr.msk.bf16.gmra.mrb[80].mxu1 %vm46_vm0, %v3773_v52 }
  0xab   :  { %3672 = vmatprep.mubr.msk.bf16.mxu1 %vm46_vm0, %v3774_v53 }
  0xb2   :  { %3673 = vmatmul.mubr.msk.bf16.gmra.mrb[84].mxu1 %vm46_vm0, %v3775_v54 }
  0xb3   :  { %3676 = vmatprep.mubr.msk.bf16.mxu1 %vm46_vm0, %v3776_v55 }
  0xba   :  { %3677 = vmatmul.mubr.msk.bf16.gmra.mrb[88].mxu1 %vm46_vm0, %v3777_v56 }
  0xdd   :  { %v3499_v58 = vpop.f32.mrb[0].mxu1 }
  0xde   :  { %v268_v59 = vadd.f32 %v3499_v58, %v4137_v57  ;;  %v259_v60 = vpop.f32.mrb[1].mxu1 }
  0xdf   :  { %v260_v2 = vadd.f32 %v4137_v57, %v259_v60  ;;  %v3500_v4 = vpop.f32.mrb[2].mxu1 }
  0xe0   :  { %v271_v5 = vadd.f32 %v3500_v4, %v4137_v57  ;;  %v262_v6 = vpop.f32.mrb[3].mxu1  ;;  %v324_v9 = vmax.f32 %v268_v59, 0.0  ;;  %v116_v15 = vpop.f32.mrb[0].mxu0 }
  0xe1   :  { %v263_v7 = vadd.f32 %v4137_v57, %v262_v6  ;;  %v322_v13 = vmax.f32 %v260_v2, 0.0  ;;  %v117_v18 = vadd.f32 %v3218_v8, %v116_v15  ;;  %v3492_v19 = vpop.f32.mrb[1].mxu0 }
  0xe2   :  { %v325_v10 = vmax.f32 %v271_v5, 0.0 }
  0xe3   :  { %v323_v14 = vmax.f32 %v263_v7, 0.0  ;;  %v120_v24 = vmax.f32 %v117_v18, 0.0 }
  0xe4   :  { %v3691_v16 = vpack.c.bf16 %v325_v10, %v324_v9 }
  0xe5   :  { %v3687_v20 = vpack.c.bf16 %v323_v14, %v322_v13  ;;  %v3503_v21 = vpop.f32.mrb[4].mxu1  ;;  %v4162_v31 = vmul.f32 0.0078125, %v120_v24 }
  0xe6   :  { %v284_v22 = vadd.f32 %v3503_v21, %v4137_v57  ;;  %v275_v23 = vpop.f32.mrb[5].mxu1 }
  0xe7   :  { %3689 = vmatpush3.bf16.xpose.msk.msra.mxu0 %vm4151_vm2, %v3687_v20  ;;  %v276_v26 = vadd.f32 %v4137_v57, %v275_v23  ;;  %v3504_v27 = vpop.f32.mrb[6].mxu1  ;;  %v1777_v35 = vcombine.high %v4162_v31, %v4162_v31  ;;  %v1784_v36 = vrot.slane %v4162_v31, %v1783_v25 }
  0xe8   :  { %v328_v28 = vmax.f32 %v284_v22, 0.0  ;;  %v287_v29 = vadd.f32 %v3504_v27, %v4137_v57  ;;  %v278_v30 = vpop.f32.mrb[7].mxu1  ;;  %3690 = vmatprep.subr.bf16.mxu0 %v3854_v3 }
  0xe9   :  { %v326_v32 = vmax.f32 %v276_v26, 0.0  ;;  %v279_v33 = vadd.f32 %v4137_v57, %v278_v30  ;;  %v1791_v39 = vrot.slane %v1777_v35, %v1783_v25  ;;  %v1792_v40 = vcombine.high %v1784_v36, %v1784_v36 }
  0xea   :  { %v329_v34 = vmax.f32 %v287_v29, 0.0  ;;  %v1800_v41 = vrot.slane %v1784_v36, %v1783_v25 }
  0xeb   :  { %v327_v37 = vmax.f32 %v279_v33, 0.0  ;;  %v1793_v45 = vcombine.high %v1791_v39, %v1791_v39  ;;  %v4171_v46 = vrot.slane %v1791_v39, %v1783_v25  ;;  %v1814_v47 = vrot.slane %v1792_v40, %v1783_v25 }
  0xec   :  { %v3699_v38 = vpack.c.bf16 %v329_v34, %v328_v28  ;;  %v1822_v48 = vcombine.high %v1800_v41, %v1800_v41  ;;  %v4176_v50 = vrot.slane %v1800_v41, %v4169_v43 }
  0xed   :  { %v3695_v42 = vpack.c.bf16 %v327_v37, %v326_v32  ;;  %v3507_v44 = vpop.f32.mrb[8].mxu1  ;;  %v4180_v54 = vrot.slane %v1793_v45, %v1783_v25  ;;  %v1823_v55 = vcombine.high %v4171_v46, %v4171_v46  ;;  %v4185_v56 = vrot.slane %v1814_v47, %v4169_v43 }
  0xee   :  { %v291_v49 = vpop.f32.mrb[9].mxu1  ;;  %v300_v51 = vadd.f32 %v3507_v44, %v4137_v57  ;;  %v4189_v59 = vrot.slane %v1822_v48, %v4169_v43  ;;  %v1824_v23 = vcombine.high %v1814_v47, %v1814_v47 }
  0xef   :  { %3693 = vmatpush3.bf16.xpose.msk.msra.mxu0 %vm4151_vm2, %v3691_v16  ;;  %v292_v52 = vadd.f32 %v4137_v57, %v291_v49  ;;  %v3508_v53 = vpop.f32.mrb[10].mxu1  ;;  %v1825_v60 = vcombine.high %v4180_v54, %v4180_v54  ;;  %v4194_v62 = vrot.slane %v1823_v55, %v4169_v43 }
  0xf0   :  { %3694 = vmatprep.subr.bf16.mxu0 %v3854_v3  ;;  %v294_v58 = vpop.f32.mrb[11].mxu1  ;;  %v332_v63 = vmax.f32 %v300_v51, 0.0  ;;  %v303_v4 = vadd.f32 %v3508_v53, %v4137_v57  ;;  %v4215_v29 = vrot.slane %v1824_v23, %v4169_v43 }
  0xf1   :  { %v330_v2 = vmax.f32 %v292_v52, 0.0  ;;  %v295_v5 = vadd.f32 %v4137_v57, %v294_v58  ;;  %v4199_v6 = vrot.slane %v1825_v60, %v4169_v43 }
  0xf2   :  { %v333_v7 = vmax.f32 %v303_v4, 0.0 }
  0xf3   :  { %v331_v8 = vmax.f32 %v295_v5, 0.0 }
  0xf4   :  { %v4202_v13 = vpack.c.bf16 %v333_v7, %v332_v63 }
  0xf5   :  { %v3511_v9 = vpop.f32.mrb[12].mxu1  ;;  %v3703_v14 = vpack.c.bf16 %v331_v8, %v330_v2 }
  0xf6   :  { %v316_v10 = vadd.f32 %v3511_v9, %v4137_v57  ;;  %v307_v11 = vpop.f32.mrb[13].mxu1 }
  0xf7   :  { %3697 = vmatpush3.bf16.xpose.msk.msra.mxu0 %vm4151_vm2, %v3695_v42  ;;  %v308_v15 = vadd.f32 %v4137_v57, %v307_v11  ;;  %v3512_v16 = vpop.f32.mrb[14].mxu1 }
  0xf8   :  { %v336_v18 = vmax.f32 %v316_v10, 0.0  ;;  %v319_v19 = vadd.f32 %v3512_v16, %v4137_v57  ;;  %v310_v20 = vpop.f32.mrb[15].mxu1  ;;  %3698 = vmatprep.subr.bf16.mxu0 %v3854_v3 }
  0xf9   :  { %v334_v21 = vmax.f32 %v308_v15, 0.0  ;;  %v311_v22 = vadd.f32 %v4137_v57, %v310_v20 }
  0xfa   :  { %v337_v24 = vmax.f32 %v319_v19, 0.0 }
  0xfb   :  { %v335_v25 = vmax.f32 %v311_v22, 0.0 }
  0xfc   :  { %v4210_v26 = vpack.c.bf16 %v337_v24, %v336_v18 }
  0xfd   :  { %v4212_v27 = vpack.c.bf16 %v335_v25, %v334_v21  ;;  %v3606_v28 = vpop.f32.mrb[16].mxu1 }
  0xfe   :  { %v1355_v30 = vadd.f32 %v3606_v28, %v4137_v57  ;;  %v1346_v32 = vpop.f32.mrb[17].mxu1 }
  0xff   :  { %v1347_v33 = vadd.f32 %v4137_v57, %v1346_v32  ;;  %3701 = vmatpush3.bf16.xpose.msk.msra.mxu0 %vm4151_vm2, %v3699_v38  ;;  %v3607_v34 = vpop.f32.mrb[18].mxu1 }
 0x100   :  { %v1703_v35 = vmax.f32 %v1355_v30, 0.0  ;;  %v1358_v36 = vadd.f32 %v3607_v34, %v4137_v57  ;;  %v1349_v37 = vpop.f32.mrb[19].mxu1  ;;  %3702 = vmatprep.subr.bf16.mxu0 %v3854_v3 }
 0x101   :  { %v1701_v39 = vmax.f32 %v1347_v33, 0.0  ;;  %v1350_v40 = vadd.f32 %v4137_v57, %v1349_v37 }
 0x102   :  { %v1704_v41 = vmax.f32 %v1358_v36, 0.0  ;;  %v1920_v42 = vmul.f32 %v4215_v29, %v1703_v35 }
 0x103   :  { %v1702_v44 = vmax.f32 %v1350_v40, 0.0  ;;  %v1918_v45 = vmul.f32 %v4215_v29, %v1701_v39 }
 0x104   :  { %v2156_v47 = vsel %vm46_vm0, %v1920_v42, 0.0  ;;  %v1921_v38 = vmul.f32 %v4215_v29, %v1704_v41 }
 0x105   :  { %v3610_v48 = vpop.f32.mrb[20].mxu1  ;;  %2157 = vadd.xlane.f32.xlu0 %v2156_v47  ;;  %v1919_v49 = vmul.f32 %v4215_v29, %v1702_v44  ;;  %v2150_v55 = vsel %vm46_vm0, %v1918_v45, 0.0  ;;  %v4262_v45 = vrot.slane %v4171_v46, %v4169_v43 }
 0x106   :  { %v1371_v51 = vadd.f32 %v3610_v48, %v4137_v57  ;;  %v1362_v52 = vpop.f32.mrb[21].mxu1  ;;  %v2159_v53 = vsel %vm46_vm0, %v1921_v38, 0.0 }
 0x107   :  { %v1363_v58 = vadd.f32 %v4137_v57, %v1362_v52  ;;  %3705 = vmatpush3.bf16.xpose.msk.msra.mxu0 %vm4151_vm2, %v3703_v14  ;;  %v3611_v60 = vpop.f32.mrb[22].mxu1  ;;  %2160 = vadd.xlane.f32.xlu1 %v2159_v53  ;;  %v2153_v5 = vsel %vm46_vm0, %v1919_v49, 0.0 }
 0x108   :  { %v1707_v63 = vmax.f32 %v1371_v51, 0.0  ;;  %v1374_v2 = vadd.f32 %v3611_v60, %v4137_v57  ;;  %v1365_v4 = vpop.f32.mrb[23].mxu1  ;;  %3706 = vmatprep.subr.bf16.mxu0 %v3854_v3 }
 0x109   :  { %v1705_v7 = vmax.f32 %v1363_v58, 0.0  ;;  %2151 = vadd.xlane.f32.xlu0 %v2150_v55  ;;  %v1366_v8 = vadd.f32 %v4137_v57, %v1365_v4 }
 0x10a   :  { %v1708_v9 = vmax.f32 %v1374_v2, 0.0  ;;  %v1924_v10 = vmul.f32 %v4215_v29, %v1707_v63 }
 0x10b   :  { %v1706_v11 = vmax.f32 %v1366_v8, 0.0  ;;  %2154 = vadd.xlane.f32.xlu1 %v2153_v5  ;;  %v1922_v14 = vmul.f32 %v4215_v29, %v1705_v7 }
 0x10c   :  { %v2168_v15 = vsel %vm46_vm0, %v1924_v10, 0.0  ;;  %v1925_v16 = vmul.f32 %v4215_v29, %v1708_v9 }
 0x10d   :  { %v3614_v18 = vpop.f32.mrb[24].mxu1  ;;  %2169 = vadd.xlane.f32.xlu0 %v2168_v15  ;;  %v1923_v19 = vmul.f32 %v4215_v29, %v1706_v11  ;;  %v2162_v23 = vsel %vm46_vm0, %v1922_v14, 0.0 }
 0x10e   :  { %v1387_v20 = vadd.f32 %v3614_v18, %v4137_v57  ;;  %v1378_v21 = vpop.f32.mrb[25].mxu1  ;;  %v2171_v22 = vsel %vm46_vm0, %v1925_v16, 0.0 }
 0x10f   :  { %v1379_v24 = vadd.f32 %v4137_v57, %v1378_v21  ;;  %3709 = vmatpush3.bf16.xpose.msk.msra.mxu0 %vm4151_vm2, %v4202_v13  ;;  %v3615_v25 = vpop.f32.mrb[26].mxu1  ;;  %2172 = vadd.xlane.f32.xlu1 %v2171_v22  ;;  %v2165_v33 = vsel %vm46_vm0, %v1923_v19, 0.0 }
 0x110   :  { %v1711_v28 = vmax.f32 %v1387_v20, 0.0  ;;  %v1390_v30 = vadd.f32 %v3615_v25, %v4137_v57  ;;  %v1381_v32 = vpop.f32.mrb[27].mxu1  ;;  %3710 = vmatprep.subr.bf16.mxu0 %v3854_v3 }
 0x111   :  { %v1709_v34 = vmax.f32 %v1379_v24, 0.0  ;;  %2163 = vadd.xlane.f32.xlu0 %v2162_v23  ;;  %v1382_v35 = vadd.f32 %v4137_v57, %v1381_v32 }
 0x112   :  { %v1712_v36 = vmax.f32 %v1390_v30, 0.0  ;;  %v1928_v37 = vmul.f32 %v4215_v29, %v1711_v28 }
 0x113   :  { %v1710_v39 = vmax.f32 %v1382_v35, 0.0  ;;  %2166 = vadd.xlane.f32.xlu1 %v2165_v33  ;;  %v1926_v13 = vmul.f32 %v4215_v29, %v1709_v34  ;;  %v3778_v33 = vld [vmem:[%s5231_s1] sm:$0xff]  }
 0x114   :  { %v2180_v40 = vsel %vm46_vm0, %v1928_v37, 0.0  ;;  %v1929_v41 = vmul.f32 %v4215_v29, %v1712_v36 }
 0x115   :  { %v3618_v42 = vpop.f32.mrb[28].mxu1  ;;  %2181 = vadd.xlane.f32.xlu0 %v2180_v40  ;;  %v1927_v44 = vmul.f32 %v4215_v29, %v1710_v39  ;;  %v2174_v49 = vsel %vm46_vm0, %v1926_v13, 0.0 }
 0x116   :  { %v1403_v47 = vadd.f32 %v3618_v42, %v4137_v57  ;;  %v1394_v38 = vpop.f32.mrb[29].mxu1  ;;  %v2183_v48 = vsel %vm46_vm0, %v1929_v41, 0.0 }
 0x117   :  { %v1395_v51 = vadd.f32 %v4137_v57, %v1394_v38  ;;  %3713 = vmatpush3.bf16.xpose.msk.msra.mxu0 %vm4151_vm2, %v4212_v27  ;;  %v3619_v52 = vpop.f32.mrb[30].mxu1  ;;  %2184 = vadd.xlane.f32.xlu1 %v2183_v48  ;;  %v2177_v58 = vsel %vm46_vm0, %v1927_v44, 0.0 }
 0x118   :  { %v1715_v53 = vmax.f32 %v1403_v47, 0.0  ;;  %v1406_v55 = vadd.f32 %v3619_v52, %v4137_v57  ;;  %v1397_v46 = vpop.f32.mrb[31].mxu1  ;;  %3714 = vmatprep.subr.bf16.mxu0 %v3854_v3 }
 0x119   :  { %v1713_v60 = vmax.f32 %v1395_v51, 0.0  ;;  %2175 = vadd.xlane.f32.xlu0 %v2174_v49  ;;  %v1398_v63 = vadd.f32 %v4137_v57, %v1397_v46 }
 0x11a   :  { %v1716_v2 = vmax.f32 %v1406_v55, 0.0  ;;  %v1932_v4 = vmul.f32 %v4262_v45, %v1715_v53  ;;  %v3780_v55 = vld [vmem:[%s5231_s1 + $0x10] sm:$0xff]  }
 0x11b   :  { %v1714_v5 = vmax.f32 %v1398_v63, 0.0  ;;  %2178 = vadd.xlane.f32.xlu1 %v2177_v58  ;;  %v1930_v27 = vmul.f32 %v4262_v45, %v1713_v60 }
 0x11c   :  { %v2192_v7 = vsel %vm46_vm0, %v1932_v4, 0.0  ;;  %v1933_v8 = vmul.f32 %v4262_v45, %v1716_v2 }
 0x11d   :  { %v3622_v9 = vpop.f32.mrb[32].mxu1  ;;  %2193 = vadd.xlane.f32.xlu0 %v2192_v7  ;;  %v1931_v10 = vmul.f32 %v4262_v45, %v1714_v5  ;;  %v2186_v15 = vsel %vm46_vm0, %v1930_v27, 0.0 }
 0x11e   :  { %v1419_v3 = vadd.f32 %v3622_v9, %v4137_v57  ;;  %v1410_v11 = vpop.f32.mrb[33].mxu1  ;;  %v2195_v14 = vsel %vm46_vm0, %v1933_v8, 0.0 }
 0x11f   :  { %v1411_v16 = vadd.f32 %v4137_v57, %v1410_v11  ;;  %3717 = vmatpush3.bf16.xpose.msk.msra.mxu0 %vm4151_vm2, %v4210_v26  ;;  %v3623_v18 = vpop.f32.mrb[34].mxu1  ;;  %2196 = vadd.xlane.f32.xlu1 %v2195_v14  ;;  %v2189_v22 = vsel %vm46_vm0, %v1931_v10, 0.0 }
 0x120   :  { %v1719_v19 = vmax.f32 %v1419_v3, 0.0  ;;  %v1422_v20 = vadd.f32 %v3623_v18, %v4137_v57  ;;  %v1413_v21 = vpop.f32.mrb[35].mxu1  ;;  %3548 = vmatprep.subr.bf16.mxu0 %v3914_v0  ;;  %v3781_v18 = vld [vmem:[%s5231_s1 + $0x18] sm:$0xff]  }
 0x121   :  { %v1717_v23 = vmax.f32 %v1411_v16, 0.0  ;;  %2187 = vadd.xlane.f32.xlu0 %v2186_v15  ;;  %v1414_v24 = vadd.f32 %v4137_v57, %v1413_v21  ;;  %v3782_v21 = vld [vmem:[%s5231_s1 + $0x20] sm:$0xff]  }
 0x122   :  { %v1720_v25 = vmax.f32 %v1422_v20, 0.0  ;;  %v1936_v28 = vmul.f32 %v4262_v45, %v1719_v19 }
 0x123   :  { %v1718_v30 = vmax.f32 %v1414_v24, 0.0  ;;  %2190 = vadd.xlane.f32.xlu1 %v2189_v22  ;;  %v1934_v17 = vmul.f32 %v4262_v45, %v1717_v23 }
 0x124   :  { %v2204_v26 = vsel %vm46_vm0, %v1936_v28, 0.0  ;;  %v1937_v32 = vmul.f32 %v4262_v45, %v1720_v25 }
 0x125   :  { %v3626_v34 = vpop.f32.mrb[36].mxu1  ;;  %2205 = vadd.xlane.f32.xlu0 %v2204_v26  ;;  %v1935_v35 = vmul.f32 %v4262_v45, %v1718_v30  ;;  %v2198_v13 = vsel %vm46_vm0, %v1934_v17, 0.0 }
 0x126   :  { %v1435_v36 = vadd.f32 %v3626_v34, %v4137_v57  ;;  %3546 = vmatmul.mubr.msk.f32.vlgmr.msra.gmra.mrb[2].mxu0 %vm46_vm0, %v4162_v31  ;;  %v1426_v37 = vpop.f32.mrb[37].mxu1  ;;  %v2207_v39 = vsel %vm46_vm0, %v1937_v32, 0.0 }
 0x127   :  { %v1427_v40 = vadd.f32 %v4137_v57, %v1426_v37  ;;  %v3627_v41 = vpop.f32.mrb[38].mxu1  ;;  %2208 = vadd.xlane.f32.xlu1 %v2207_v39  ;;  %3549 = vmatpush3.bf16.msra.mxu0 %v3914_v0  ;;  %v2201_v38 = vsel %vm46_vm0, %v1935_v35, 0.0  ;;  %v3779_v0 = vld [vmem:[%s5231_s1 + $0x8] sm:$0xff]  }
 0x128   :  { %v1723_v42 = vmax.f32 %v1435_v36, 0.0  ;;  %v1438_v44 = vadd.f32 %v3627_v41, %v4137_v57  ;;  %3550 = vmatprep.subr.bf16.mxu0 %v3919_v1  ;;  %v1429_v47 = vpop.f32.mrb[39].mxu1  ;;  %3552 = vmatprep.mubr.msk.bf16.mxu0 %vm46_vm0, %v3778_v33  ;;  %v4350_v33 = vrot.slane %v4180_v54, %v4169_v43  ;;  %v3783_v43 = vld [vmem:[%s5231_s1 + $0x28] sm:$0xff]  }
 0x129   :  { %v1721_v31 = vmax.f32 %v1427_v40, 0.0  ;;  %2199 = vadd.xlane.f32.xlu0 %v2198_v13  ;;  %v1430_v48 = vadd.f32 %v4137_v57, %v1429_v47 }
 0x12a   :  { %v1724_v49 = vmax.f32 %v1438_v44, 0.0  ;;  %v1940_v51 = vmul.f32 %v4262_v45, %v1723_v42  ;;  %v3784_v44 = vld [vmem:[%s5231_s1 + $0x30] sm:$0xff]  }
 0x12b   :  { %v1722_v52 = vmax.f32 %v1430_v48, 0.0  ;;  %2202 = vadd.xlane.f32.xlu1 %v2201_v38  ;;  %3551 = vmatpush3.bf16.msra.mxu0 %v3919_v1  ;;  %v1938_v53 = vmul.f32 %v4262_v45, %v1721_v31 }
 0x12c   :  { %v2216_v46 = vsel %vm46_vm0, %v1940_v51, 0.0  ;;  %v1941_v58 = vmul.f32 %v4262_v45, %v1724_v49 }
 0x12d   :  { %v3630_v60 = vpop.f32.mrb[40].mxu1  ;;  %2217 = vadd.xlane.f32.xlu0 %v2216_v46  ;;  %v1939_v63 = vmul.f32 %v4262_v45, %v1722_v52  ;;  %v2210_v5 = vsel %vm46_vm0, %v1938_v53, 0.0 }
 0x12e   :  { %v1451_v2 = vadd.f32 %v3630_v60, %v4137_v57  ;;  %3553 = vmatmul.mubr.msk.bf16.vlgmr.msra.gmra.mrb[4].mxu0 %vm46_vm0, %v3779_v0  ;;  %v1442_v4 = vpop.f32.mrb[41].mxu1  ;;  %v2219_v1 = vsel %vm46_vm0, %v1941_v58, 0.0 }
 0x12f   :  { %v1443_v27 = vadd.f32 %v4137_v57, %v1442_v4  ;;  %v3631_v7 = vpop.f32.mrb[42].mxu1  ;;  %2220 = vadd.xlane.f32.xlu1 %v2219_v1  ;;  %3556 = vmatprep.mubr.msk.bf16.mxu0 %vm46_vm0, %v3780_v55  ;;  %v2213_v3 = vsel %vm46_vm0, %v1939_v63, 0.0 }
 0x130   :  { %v1727_v8 = vmax.f32 %v1451_v2, 0.0  ;;  %v1454_v9 = vadd.f32 %v3631_v7, %v4137_v57  ;;  %v1445_v10 = vpop.f32.mrb[43].mxu1 }
 0x131   :  { %v1725_v11 = vmax.f32 %v1443_v27, 0.0  ;;  %v1446_v14 = vadd.f32 %v4137_v57, %v1445_v10  ;;  %2211 = vadd.xlane.f32.xlu0 %v2210_v5  ;;  %v3785_v27 = vld [vmem:[%s5231_s1 + $0x38] sm:$0xff]  }
 0x132   :  { %v1728_v15 = vmax.f32 %v1454_v9, 0.0  ;;  %v1944_v16 = vmul.f32 %v4262_v45, %v1727_v8  ;;  %v3786_v9 = vld [vmem:[%s5231_s1 + $0x40] sm:$0xff]  }
 0x133   :  { %v1726_v19 = vmax.f32 %v1446_v14, 0.0  ;;  %2214 = vadd.xlane.f32.xlu1 %v2213_v3  ;;  %v1942_v20 = vmul.f32 %v4262_v45, %v1725_v11 }
 0x134   :  { %v2228_v22 = vsel %vm46_vm0, %v1944_v16, 0.0  ;;  %v1945_v23 = vmul.f32 %v4262_v45, %v1728_v15 }
 0x135   :  { %v3634_v24 = vpop.f32.mrb[44].mxu1  ;;  %2229 = vadd.xlane.f32.xlu0 %v2228_v22  ;;  %v1943_v25 = vmul.f32 %v4262_v45, %v1726_v19  ;;  %v2222_v36 = vsel %vm46_vm0, %v1942_v20, 0.0 }
 0x136   :  { %v1467_v28 = vadd.f32 %v3634_v24, %v4137_v57  ;;  %3557 = vmatmul.mubr.msk.bf16.gmra.mrb[8].mxu0 %vm46_vm0, %v3781_v18  ;;  %v1458_v30 = vpop.f32.mrb[45].mxu1  ;;  %v2231_v17 = vsel %vm46_vm0, %v1945_v23, 0.0 }
 0x137   :  { %v1459_v26 = vadd.f32 %v4137_v57, %v1458_v30  ;;  %v3635_v32 = vpop.f32.mrb[46].mxu1  ;;  %2232 = vadd.xlane.f32.xlu1 %v2231_v17  ;;  %3560 = vmatprep.mubr.msk.bf16.mxu0 %vm46_vm0, %v3782_v21  ;;  %v2225_v40 = vsel %vm46_vm0, %v1943_v25, 0.0 }
 0x138   :  { %v1731_v34 = vmax.f32 %v1467_v28, 0.0  ;;  %v1470_v45 = vadd.f32 %v3635_v32, %v4137_v57  ;;  %v1461_v35 = vpop.f32.mrb[47].mxu1  ;;  %v3787_v32 = vld [vmem:[%s5231_s1 + $0x48] sm:$0xff]  }
 0x139   :  { %v1729_v37 = vmax.f32 %v1459_v26, 0.0  ;;  %v1462_v39 = vadd.f32 %v4137_v57, %v1461_v35  ;;  %2223 = vadd.xlane.f32.xlu0 %v2222_v36  ;;  %v3788_v35 = vld [vmem:[%s5231_s1 + $0x50] sm:$0xff]  }
 0x13a   :  { %v1732_v13 = vmax.f32 %v1470_v45, 0.0  ;;  %v1948_v41 = vmul.f32 %v4350_v33, %v1731_v34 }
 0x13b   :  { %v1730_v54 = vmax.f32 %v1462_v39, 0.0  ;;  %2226 = vadd.xlane.f32.xlu1 %v2225_v40  ;;  %v1946_v42 = vmul.f32 %v4350_v33, %v1729_v37 }
 0x13c   :  { %v2240_v47 = vsel %vm46_vm0, %v1948_v41, 0.0  ;;  %v1949_v38 = vmul.f32 %v4350_v33, %v1732_v13 }
 0x13d   :  { %v3638_v31 = vpop.f32.mrb[48].mxu1  ;;  %2241 = vadd.xlane.f32.xlu0 %v2240_v47  ;;  %v1947_v48 = vmul.f32 %v4350_v33, %v1730_v54  ;;  %v2234_v60 = vsel %vm46_vm0, %v1946_v42, 0.0 }
 0x13e   :  { %v1483_v49 = vadd.f32 %v3638_v31, %v4137_v57  ;;  %3561 = vmatmul.mubr.msk.bf16.gmra.mrb[12].mxu0 %vm46_vm0, %v3783_v43  ;;  %v1474_v51 = vpop.f32.mrb[49].mxu1  ;;  %v2243_v0 = vsel %vm46_vm0, %v1949_v38, 0.0 }
 0x13f   :  { %v1475_v52 = vadd.f32 %v4137_v57, %v1474_v51  ;;  %v3639_v53 = vpop.f32.mrb[50].mxu1  ;;  %2244 = vadd.xlane.f32.xlu1 %v2243_v0  ;;  %3564 = vmatprep.mubr.msk.bf16.mxu0 %vm46_vm0, %v3784_v44  ;;  %v2237_v1 = vsel %vm46_vm0, %v1947_v48, 0.0 }
 0x140   :  { %v1735_v55 = vmax.f32 %v1483_v49, 0.0  ;;  %v1486_v46 = vadd.f32 %v3639_v53, %v4137_v57  ;;  %v1477_v58 = vpop.f32.mrb[51].mxu1  ;;  %v3789_v53 = vld [vmem:[%s5231_s1 + $0x58] sm:$0xff]  }
 0x141   :  { %v1733_v63 = vmax.f32 %v1475_v52, 0.0  ;;  %v1478_v2 = vadd.f32 %v4137_v57, %v1477_v58  ;;  %2235 = vadd.xlane.f32.xlu0 %v2234_v60  ;;  %v3790_v58 = vld [vmem:[%s5231_s1 + $0x60] sm:$0xff]  }
 0x142   :  { %v1736_v4 = vmax.f32 %v1486_v46, 0.0  ;;  %v1952_v5 = vmul.f32 %v4350_v33, %v1735_v55 }
 0x143   :  { %v1734_v7 = vmax.f32 %v1478_v2, 0.0  ;;  %2238 = vadd.xlane.f32.xlu1 %v2237_v1  ;;  %v1950_v8 = vmul.f32 %v4350_v33, %v1733_v63 }
 0x144   :  { %v2252_v10 = vsel %vm46_vm0, %v1952_v5, 0.0  ;;  %v1953_v3 = vmul.f32 %v4350_v33, %v1736_v4 }
 0x145   :  { %v3642_v11 = vpop.f32.mrb[52].mxu1  ;;  %2253 = vadd.xlane.f32.xlu0 %v2252_v10  ;;  %v1951_v14 = vmul.f32 %v4350_v33, %v1734_v7  ;;  %v2246_v24 = vsel %vm46_vm0, %v1950_v8, 0.0 }
 0x146   :  { %v1499_v15 = vadd.f32 %v3642_v11, %v4137_v57  ;;  %3565 = vmatmul.mubr.msk.bf16.gmra.mrb[16].mxu0 %vm46_vm0, %v3785_v27  ;;  %v1490_v16 = vpop.f32.mrb[53].mxu1  ;;  %v2255_v18 = vsel %vm46_vm0, %v1953_v3, 0.0 }
 0x147   :  { %v1491_v19 = vadd.f32 %v4137_v57, %v1490_v16  ;;  %v3643_v20 = vpop.f32.mrb[54].mxu1  ;;  %2256 = vadd.xlane.f32.xlu1 %v2255_v18  ;;  %3568 = vmatprep.mubr.msk.bf16.mxu0 %vm46_vm0, %v3786_v9  ;;  %v2249_v17 = vsel %vm46_vm0, %v1951_v14, 0.0  ;;  %v3791_v16 = vld [vmem:[%s5231_s1 + $0x68] sm:$0xff]  }
 0x148   :  { %v1739_v21 = vmax.f32 %v1499_v15, 0.0  ;;  %v1502_v22 = vadd.f32 %v3643_v20, %v4137_v57  ;;  %v1493_v23 = vpop.f32.mrb[55].mxu1  ;;  %v3792_v20 = vld [vmem:[%s5231_s1 + $0x70] sm:$0xff]  }
 0x149   :  { %v1737_v25 = vmax.f32 %v1491_v19, 0.0  ;;  %v1494_v28 = vadd.f32 %v4137_v57, %v1493_v23  ;;  %2247 = vadd.xlane.f32.xlu0 %v2246_v24 }
 0x14a   :  { %v1740_v30 = vmax.f32 %v1502_v22, 0.0  ;;  %v1956_v26 = vmul.f32 %v4350_v33, %v1739_v21 }
 0x14b   :  { %v1738_v34 = vmax.f32 %v1494_v28, 0.0  ;;  %2250 = vadd.xlane.f32.xlu1 %v2249_v17  ;;  %v1954_v45 = vmul.f32 %v4350_v33, %v1737_v25 }
 0x14c   :  { %v2264_v36 = vsel %vm46_vm0, %v1956_v26, 0.0  ;;  %v1957_v37 = vmul.f32 %v4350_v33, %v1740_v30 }
 0x14d   :  { %v3646_v39 = vpop.f32.mrb[56].mxu1  ;;  %2265 = vadd.xlane.f32.xlu0 %v2264_v36  ;;  %v1955_v13 = vmul.f32 %v4350_v33, %v1738_v34  ;;  %v2258_v31 = vsel %vm46_vm0, %v1954_v45, 0.0 }
 0x14e   :  { %v1515_v40 = vadd.f32 %v3646_v39, %v4137_v57  ;;  %3569 = vmatmul.mubr.msk.bf16.gmra.mrb[20].mxu0 %vm46_vm0, %v3787_v32  ;;  %v1506_v41 = vpop.f32.mrb[57].mxu1  ;;  %v2267_v43 = vsel %vm46_vm0, %v1957_v37, 0.0 }
 0x14f   :  { %v1507_v54 = vadd.f32 %v4137_v57, %v1506_v41  ;;  %v3647_v42 = vpop.f32.mrb[58].mxu1  ;;  %2268 = vadd.xlane.f32.xlu1 %v2267_v43  ;;  %3572 = vmatprep.mubr.msk.bf16.mxu0 %vm46_vm0, %v3788_v35  ;;  %v2261_v52 = vsel %vm46_vm0, %v1955_v13, 0.0 }
 0x150   :  { %v1743_v44 = vmax.f32 %v1515_v40, 0.0  ;;  %v1518_v47 = vadd.f32 %v3647_v42, %v4137_v57  ;;  %v1509_v38 = vpop.f32.mrb[59].mxu1  ;;  %v3793_v40 = vld [vmem:[%s5231_s1 + $0x78] sm:$0xff]   ;;  %v3794_v42 = vld [vmem:[%s5231_s1 + $0x80] sm:$0xff]  }
 0x151   :  { %v1741_v48 = vmax.f32 %v1507_v54, 0.0  ;;  %v1510_v49 = vadd.f32 %v4137_v57, %v1509_v38  ;;  %2259 = vadd.xlane.f32.xlu0 %v2258_v31 }
 0x152   :  { %v4416_v51 = vmul.f32 %v4350_v33, %v1743_v44  ;;  %v1744_v0 = vmax.f32 %v1518_v47, 0.0 }
 0x153   :  { %v1742_v55 = vmax.f32 %v1510_v49, 0.0  ;;  %2262 = vadd.xlane.f32.xlu1 %v2261_v52  ;;  %v1958_v46 = vmul.f32 %v4350_v33, %v1741_v48 }
 0x154   :  { %v4427_v60 = vmul.f32 %v4350_v33, %v1744_v0 }
 0x155   :  { %v3650_v63 = vpop.f32.mrb[60].mxu1  ;;  %v2270_v2 = vsel %vm46_vm0, %v1958_v46, 0.0  ;;  %v1959_v4 = vmul.f32 %v4350_v33, %v1742_v55 }
 0x156   :  { %v1531_v1 = vadd.f32 %v3650_v63, %v4137_v57  ;;  %v1522_v5 = vpop.f32.mrb[61].mxu1  ;;  %2271 = vadd.xlane.f32.xlu0 %v2270_v2  ;;  %3573 = vmatmul.mubr.msk.bf16.gmra.mrb[24].mxu0 %vm46_vm0, %v3789_v53 }
 0x157   :  { %v1523_v27 = vadd.f32 %v4137_v57, %v1522_v5  ;;  %v3651_v7 = vpop.f32.mrb[62].mxu1  ;;  %3576 = vmatprep.mubr.msk.bf16.mxu0 %vm46_vm0, %v3790_v58  ;;  %v2273_v33 = vsel %vm46_vm0, %v1959_v4, 0.0 }
 0x158   :  { %v1747_v8 = vmax.f32 %v1531_v1, 0.0  ;;  %v1534_v9 = vadd.f32 %v3651_v7, %v4137_v57  ;;  %v1525_v10 = vpop.f32.mrb[63].mxu1  ;;  %v3795_v1 = vld [vmem:[%s5231_s1 + $0x88] sm:$0xff]   ;;  %v3796_v7 = vld [vmem:[%s5231_s1 + $0x90] sm:$0xff]  }
 0x159   :  { %v1745_v3 = vmax.f32 %v1523_v27, 0.0  ;;  %v1526_v11 = vadd.f32 %v4137_v57, %v1525_v10 }
 0x15a   :  { %v1748_v14 = vmax.f32 %v1534_v9, 0.0  ;;  %2274 = vadd.xlane.f32.xlu0 %v2273_v33  ;;  %v1964_v15 = vmul.f32 %v4194_v62, %v1747_v8 }
 0x15b   :  { %v1746_v18 = vmax.f32 %v1526_v11, 0.0  ;;  %v1962_v19 = vmul.f32 %v4194_v62, %v1745_v3 }
 0x15c   :  { %v2288_v21 = vsel %vm46_vm0, %v1964_v15, 0.0  ;;  %v1965_v22 = vmul.f32 %v4194_v62, %v1748_v14 }
 0x15d   :  { %v3654_v23 = vpop.f32.mrb[64].mxu1  ;;  %2289 = vadd.xlane.f32.xlu1 %v2288_v21  ;;  %v1963_v24 = vmul.f32 %v4194_v62, %v1746_v18  ;;  %v2282_v35 = vsel %vm46_vm0, %v1962_v19, 0.0 }
 0x15e   :  { %v1547_v25 = vadd.f32 %v3654_v23, %v4137_v57  ;;  %3577 = vmatmul.mubr.msk.bf16.gmra.mrb[28].mxu0 %vm46_vm0, %v3791_v16  ;;  %v1538_v28 = vpop.f32.mrb[65].mxu1  ;;  %v2291_v30 = vsel %vm46_vm0, %v1965_v22, 0.0 }
 0x15f   :  { %v1539_v17 = vadd.f32 %v4137_v57, %v1538_v28  ;;  %v3655_v26 = vpop.f32.mrb[66].mxu1  ;;  %2292 = vadd.xlane.f32.xlu0 %v2291_v30  ;;  %3580 = vmatprep.mubr.msk.bf16.mxu0 %vm46_vm0, %v3792_v20  ;;  %v2285_v13 = vsel %vm46_vm0, %v1963_v24, 0.0  ;;  %v3797_v28 = vld [vmem:[%s5231_s1 + $0x98] sm:$0xff]  }
 0x160   :  { %v1751_v32 = vmax.f32 %v1547_v25, 0.0  ;;  %v1550_v34 = vadd.f32 %v3655_v26, %v4137_v57  ;;  %v1541_v45 = vpop.f32.mrb[67].mxu1  ;;  %v3798_v26 = vld [vmem:[%s5231_s1 + $0xa0] sm:$0xff]  }
 0x161   :  { %v1749_v36 = vmax.f32 %v1539_v17, 0.0  ;;  %v1542_v37 = vadd.f32 %v4137_v57, %v1541_v45  ;;  %2283 = vadd.xlane.f32.xlu1 %v2282_v35 }
 0x162   :  { %v1752_v39 = vmax.f32 %v1550_v34, 0.0  ;;  %v1968_v41 = vmul.f32 %v4194_v62, %v1751_v32 }
 0x163   :  { %v1750_v43 = vmax.f32 %v1542_v37, 0.0  ;;  %2286 = vadd.xlane.f32.xlu0 %v2285_v13  ;;  %v1966_v54 = vmul.f32 %v4194_v62, %v1749_v36 }
 0x164   :  { %v1969_v44 = vmul.f32 %v4194_v62, %v1752_v39  ;;  %v2300_v49 = vsel %vm46_vm0, %v1968_v41, 0.0 }
 0x165   :  { %v3658_v47 = vpop.f32.mrb[68].mxu1  ;;  %v1967_v38 = vmul.f32 %v4194_v62, %v1750_v43  ;;  %v2294_v4 = vsel %vm46_vm0, %v1966_v54, 0.0 }
 0x166   :  { %v1563_v31 = vadd.f32 %v3658_v47, %v4137_v57  ;;  %3581 = vmatmul.mubr.msk.bf16.gmra.mrb[32].mxu0 %vm46_vm0, %v3793_v40  ;;  %v1554_v48 = vpop.f32.mrb[69].mxu1  ;;  %v2303_v14 = vsel %vm46_vm0, %v1969_v44, 0.0 }
 0x167   :  { %v1555_v0 = vadd.f32 %v4137_v57, %v1554_v48  ;;  %v3659_v52 = vpop.f32.mrb[70].mxu1  ;;  %2301 = vadd.xlane.f32.xlu0 %v2300_v49  ;;  %3584 = vmatprep.mubr.msk.bf16.mxu0 %vm46_vm0, %v3794_v42  ;;  %v2297_v25 = vsel %vm46_vm0, %v1967_v38, 0.0  ;;  %v3800_v49 = vld [vmem:[%s5231_s1 + $0xb0] sm:$0xff]  }
 0x168   :  { %v1755_v53 = vmax.f32 %v1563_v31, 0.0  ;;  %v1566_v55 = vadd.f32 %v3659_v52, %v4137_v57  ;;  %v1557_v46 = vpop.f32.mrb[71].mxu1  ;;  %v3799_v31 = vld [vmem:[%s5231_s1 + $0xa8] sm:$0xff]  }
 0x169   :  { %v1753_v58 = vmax.f32 %v1555_v0, 0.0  ;;  %v1558_v63 = vadd.f32 %v4137_v57, %v1557_v46  ;;  %v4535_v46 = vld [vmem:[%s5237_s7] ss:$0 sm:$0xff] }
 0x16a   :  { %v1756_v2 = vmax.f32 %v1566_v55, 0.0  ;;  %v1972_v5 = vmul.f32 %v4194_v62, %v1755_v53 }
 0x16b   :  { %v1754_v27 = vmax.f32 %v1558_v63, 0.0  ;;  %2295 = vadd.xlane.f32.xlu0 %v2294_v4  ;;  %v1970_v8 = vmul.f32 %v4194_v62, %v1753_v58 }
 0x16c   :  { %v1973_v9 = vmul.f32 %v4194_v62, %v1756_v2  ;;  %v2312_v39 = vsel %vm46_vm0, %v1972_v5, 0.0 }
 0x16d   :  { %v3662_v10 = vpop.f32.mrb[72].mxu1  ;;  %v4486_v3 = vmul.f32 %v4194_v62, %v1754_v27  ;;  %v2306_v47 = vsel %vm46_vm0, %v1970_v8, 0.0 }
 0x16e   :  { %v1579_v11 = vadd.f32 %v3662_v10, %v4137_v57  ;;  %3585 = vmatmul.mubr.msk.bf16.gmra.mrb[36].mxu0 %vm46_vm0, %v3795_v1  ;;  %v1570_v33 = vpop.f32.mrb[73].mxu1  ;;  %v2315_v2 = vsel %vm46_vm0, %v1973_v9, 0.0 }
 0x16f   :  { %v1571_v15 = vadd.f32 %v4137_v57, %v1570_v33  ;;  %v3663_v16 = vpop.f32.mrb[74].mxu1  ;;  %2304 = vadd.xlane.f32.xlu0 %v2303_v14  ;;  %3588 = vmatprep.mubr.msk.bf16.mxu0 %vm46_vm0, %v3796_v7  ;;  %v2309_v9 = vsel %vm46_vm0, %v4486_v3, 0.0  ;;  %v3801_v14 = vld [vmem:[%s5231_s1 + $0xb8] sm:$0xff]  }
 0x170   :  { %v1759_v18 = vmax.f32 %v1579_v11, 0.0  ;;  %v1582_v19 = vadd.f32 %v3663_v16, %v4137_v57  ;;  %v1573_v20 = vpop.f32.mrb[75].mxu1 }
 0x171   :  { %v1757_v21 = vmax.f32 %v1571_v15, 0.0  ;;  %v1574_v22 = vadd.f32 %v4137_v57, %v1573_v20 }
 0x172   :  { %v4496_v23 = vmul.f32 %v4194_v62, %v1759_v18  ;;  %v1760_v24 = vmax.f32 %v1582_v19, 0.0  ;;  %v3802_v19 = vld [vmem:[%s5231_s1 + $0xc0] sm:$0xff]  }
 0x173   :  { %v1758_v30 = vmax.f32 %v1574_v22, 0.0  ;;  %2298 = vadd.xlane.f32.xlu0 %v2297_v25  ;;  %v1974_v17 = vmul.f32 %v4194_v62, %v1757_v21 }
 0x174   :  { %v4507_v32 = vmul.f32 %v4194_v62, %v1760_v24 }
 0x175   :  { %v4510_v34 = vmul.f32 %v4194_v62, %v1758_v30  ;;  %v3666_v45 = vpop.f32.mrb[76].mxu1  ;;  %v2318_v35 = vsel %vm46_vm0, %v1974_v17, 0.0 }
 0x176   :  { %v1595_v36 = vadd.f32 %v3666_v45, %v4137_v57  ;;  %v1586_v37 = vpop.f32.mrb[77].mxu1  ;;  %2319 = vadd.xlane.f32.xlu1 %v2318_v35  ;;  %3589 = vmatmul.mubr.msk.bf16.gmra.mrb[40].mxu0 %vm46_vm0, %v3797_v28 }
 0x177   :  { %v1587_v13 = vadd.f32 %v4137_v57, %v1586_v37  ;;  %v3667_v40 = vpop.f32.mrb[78].mxu1  ;;  %2313 = vadd.xlane.f32.xlu0 %v2312_v39  ;;  %3592 = vmatprep.mubr.msk.bf16.mxu0 %vm46_vm0, %v3798_v26 }
 0x178   :  { %v1763_v41 = vmax.f32 %v1595_v36, 0.0  ;;  %v1598_v62 = vadd.f32 %v3667_v40, %v4137_v57  ;;  %v1589_v43 = vpop.f32.mrb[79].mxu1  ;;  %v3803_v40 = vld [vmem:[%s5231_s1 + $0xc8] sm:$0xff]  }
 0x179   :  { %v1761_v54 = vmax.f32 %v1587_v13, 0.0  ;;  %v1590_v42 = vadd.f32 %v4137_v57, %v1589_v43 }
 0x17a   :  { %v1764_v44 = vmax.f32 %v1598_v62, 0.0  ;;  %v1980_v38 = vmul.f32 %v4199_v6, %v1763_v41 }
 0x17b   :  { %v1762_v48 = vmax.f32 %v1590_v42, 0.0  ;;  %2307 = vadd.xlane.f32.xlu0 %v2306_v47  ;;  %v1978_v0 = vmul.f32 %v4199_v6, %v1761_v54 }
 0x17c   :  { %v2336_v52 = vsel %vm46_vm0, %v1980_v38, 0.0  ;;  %v1981_v57 = vmul.f32 %v4199_v6, %v1764_v44 }
 0x17d   :  { %v3670_v53 = vpop.f32.mrb[80].mxu1  ;;  %2337 = vadd.xlane.f32.xlu1 %v2336_v52  ;;  %v1979_v55 = vmul.f32 %v4199_v6, %v1762_v48  ;;  %v2330_v28 = vsel %vm46_vm0, %v1978_v0, 0.0 }
 0x17e   :  { %v1611_v58 = vadd.f32 %v4535_v46, %v3670_v53  ;;  %3593 = vmatmul.mubr.msk.bf16.gmra.mrb[44].mxu0 %vm46_vm0, %v3799_v31  ;;  %v1602_v63 = vpop.f32.mrb[81].mxu1  ;;  %v2339_v8 = vsel %vm46_vm0, %v1981_v57, 0.0 }
 0x17f   :  { %v1603_v4 = vadd.f32 %v4535_v46, %v1602_v63  ;;  %v3671_v1 = vpop.f32.mrb[82].mxu1  ;;  %2316 = vadd.xlane.f32.xlu0 %v2315_v2  ;;  %3596 = vmatprep.mubr.msk.bf16.mxu0 %vm46_vm0, %v3800_v49  ;;  %v2333_v20 = vsel %vm46_vm0, %v1979_v55, 0.0 }
 0x180   :  { %v1767_v5 = vmax.f32 %v1611_v58, 0.0  ;;  %v1614_v27 = vadd.f32 %v4535_v46, %v3671_v1  ;;  %v1605_v7 = vpop.f32.mrb[83].mxu1 }
 0x181   :  { %v1765_v10 = vmax.f32 %v1603_v4, 0.0  ;;  %v1606_v11 = vadd.f32 %v4535_v46, %v1605_v7  ;;  %2340 = vadd.xlane.f32.xlu1 %v2339_v8 }
 0x182   :  { %v1768_v33 = vmax.f32 %v1614_v27, 0.0  ;;  %v1984_v15 = vmul.f32 %v4199_v6, %v1767_v5 }
 0x183   :  { %v1766_v16 = vmax.f32 %v1606_v11, 0.0  ;;  %2310 = vadd.xlane.f32.xlu0 %v2309_v9  ;;  %v1982_v18 = vmul.f32 %v4199_v6, %v1765_v10 }
 0x184   :  { %v1985_v21 = vmul.f32 %v4199_v6, %v1768_v33  ;;  %v2348_v36 = vsel %vm46_vm0, %v1984_v15, 0.0 }
 0x185   :  { %v3674_v22 = vpop.f32.mrb[84].mxu1  ;;  %2334 = vadd.xlane.f32.xlu1 %v2333_v20  ;;  %v1983_v3 = vmul.f32 %v4199_v6, %v1766_v16  ;;  %v2342_v54 = vsel %vm46_vm0, %v1982_v18, 0.0 }
 0x186   :  { %v1627_v24 = vadd.f32 %v4535_v46, %v3674_v22  ;;  %3597 = vmatmul.mubr.msk.bf16.gmra.mrb[48].mxu0 %vm46_vm0, %v3801_v14  ;;  %v1618_v25 = vpop.f32.mrb[85].mxu1  ;;  %v2351_v55 = vsel %vm46_vm0, %v1985_v21, 0.0 }
 0x187   :  { %v1619_v30 = vadd.f32 %v4535_v46, %v1618_v25  ;;  %v3675_v17 = vpop.f32.mrb[86].mxu1  ;;  %2331 = vadd.xlane.f32.xlu0 %v2330_v28  ;;  %3600 = vmatprep.mubr.msk.bf16.mxu0 %vm46_vm0, %v3802_v19  ;;  %v2345_v10 = vsel %vm46_vm0, %v1983_v3, 0.0 }
 0x188   :  { %v1771_v26 = vmax.f32 %v1627_v24, 0.0  ;;  %v1630_v45 = vadd.f32 %v4535_v46, %v3675_v17  ;;  %v1621_v35 = vpop.f32.mrb[87].mxu1 }
 0x189   :  { %v1769_v37 = vmax.f32 %v1619_v30, 0.0  ;;  %v1622_v39 = vadd.f32 %v4535_v46, %v1621_v35  ;;  %2349 = vadd.xlane.f32.xlu1 %v2348_v36 }
 0x18a   :  { %v1772_v13 = vmax.f32 %v1630_v45, 0.0  ;;  %v1988_v41 = vmul.f32 %v4199_v6, %v1771_v26 }
 0x18b   :  { %v1770_v62 = vmax.f32 %v1622_v39, 0.0  ;;  %v1986_v43 = vmul.f32 %v4199_v6, %v1769_v37 }
 0x18c   :  { %v1989_v42 = vmul.f32 %v4199_v6, %v1772_v13  ;;  %v2360_v14 = vsel %vm46_vm0, %v1988_v41, 0.0 }
 0x18d   :  { %v3678_v44 = vpop.f32.mrb[88].mxu1  ;;  %2343 = vadd.xlane.f32.xlu1 %v2342_v54  ;;  %v1987_v47 = vmul.f32 %v4199_v6, %v1770_v62  ;;  %v2354_v18 = vsel %vm46_vm0, %v1986_v43, 0.0  ;;  %v4652_v54 = vand.u32 127, %v459_v61 }
 0x18e   :  { %v1643_v38 = vadd.f32 %v4535_v46, %v3678_v44  ;;  %3601 = vmatmul.mubr.msk.bf16.gmra.mrb[52].mxu0 %vm46_vm0, %v3803_v40  ;;  %v1634_v31 = vpop.f32.mrb[89].mxu1  ;;  %v2363_v48 = vsel %vm46_vm0, %v1989_v42, 0.0 }
 0x18f   :  { %v1635_v49 = vadd.f32 %v4535_v46, %v1634_v31  ;;  %v3679_v0 = vpop.f32.mrb[90].mxu1  ;;  %2364 = vadd.xlane.f32.xlu0 %v2363_v48  ;;  %v2522_v31 = vadd.s32 4294967280, %v4652_v54  ;;  %vm461_vm1 = vcmp.lt.s32.totalorder %v4652_v54, 4 }
 0x190   :  { %v1775_v52 = vmax.f32 %v1643_v38, 0.0  ;;  %v1646_v57 = vadd.f32 %v4535_v46, %v3679_v0  ;;  %v1637_v53 = vpop.f32.mrb[91].mxu1 }
 0x191   :  { %v1773_v58 = vmax.f32 %v1635_v49, 0.0  ;;  %v1638_v63 = vadd.f32 %v4535_v46, %v1637_v53  ;;  %2352 = vadd.xlane.f32.xlu1 %v2351_v55  ;;  %v4660_v49 = vsub.s32 %v4652_v54, %v4147_v12  ;;  %v4668_v53 = vsub.s32 %v2522_v31, %v4147_v12 }
 0x192   :  { %v4582_v2 = vmul.f32 %v4199_v6, %v1775_v52  ;;  %v1776_v4 = vmax.f32 %v1646_v57, 0.0  ;;  %v4584_v1 = vpop.xlane.xlu0 %2157  ;;  %v2529_v52 = vadd.s32 4294967272, %v4652_v54  ;;  %v2536_v57 = vadd.s32 4294967264, %v4652_v54 }
 0x193   :  { %5242 = vst [vmem:[#allocation8_spill] sm:$0xff] %v4584_v1  ;;  %v4587_v5 = vmul.f32 %v4199_v6, %v1773_v58  ;;  %v1774_v27 = vmax.f32 %v1638_v63, 0.0  ;;  %v3858_v1 = vmov 0  }
 0x194   :  { %v4590_v7 = vmul.f32 %v4199_v6, %v1776_v4  ;;  %v4592_v8 = vpop.xlane.xlu1 %2160  ;;  %v2543_v4 = vadd.s32 4294967256, %v4652_v54  ;;  %v4681_v31 = vsub.s32 %v2536_v57, %v4147_v12  ;;  %3729 = vset.pattern.permute.xlu0 %v3858_v1 }
 0x195   :  { %5243 = vst [vmem:[#allocation9_spill] sm:$0xff] %v4592_v8  ;;  %v4596_v11 = vmul.f32 %v4199_v6, %v1774_v27  ;;  %2346 = vadd.xlane.f32.xlu1 %v2345_v10  ;;  %v2357_v6 = vsel %vm46_vm0, %v1987_v47, 0.0  ;;  %v2515_v47 = vadd.s32 4294967288, %v4652_v54 }
 0x196   :  { %v4598_v33 = vpop.xlane.xlu0 %2151 }
 0x197   :  { %5244 = vst [vmem:[#allocation10_spill] sm:$0xff] %v4598_v33  ;;  %v4663_v0 = vsub.s32 %v2515_v47, %v4147_v12  ;;  %v2557_v47 = vadd.s32 4294967240, %v4652_v54 }
 0x198   :  { %v4600_v9 = vpop.xlane.xlu1 %2154 }
 0x199   :  { %5245 = vst [vmem:[#allocation11_spill] sm:$0xff] %v4600_v9  ;;  %2361 = vadd.xlane.f32.xlu1 %v2360_v14  ;;  %v2550_v14 = vadd.s32 4294967248, %v4652_v54  ;;  %v4694_v57 = vsub.s32 %v2557_v47, %v4147_v12  ;;  %v2578_v47 = vadd.s32 4294967216, %v4652_v54 }
 0x19a   :  { %v4603_v15 = vpop.xlane.xlu0 %2169 }
 0x19b   :  { %5246 = vst [vmem:[#allocation12_spill] sm:$0xff] %v4603_v15 }
 0x19c   :  { %v4605_v16 = vpop.xlane.xlu1 %2172 }
 0x19d   :  { %5247 = vst [vmem:[#allocation13_spill] sm:$0xff] %v4605_v16  ;;  %2355 = vadd.xlane.f32.xlu1 %v2354_v18  ;;  %v4677_v18 = vsub.s32 %v2529_v52, %v4147_v12  ;;  %v4690_v52 = vsub.s32 %v2550_v14, %v4147_v12  ;;  %v2571_v14 = vadd.s32 4294967224, %v4652_v54 }
 0x19e   :  { %v4608_v19 = vpop.xlane.xlu0 %2163 }
 0x19f   :  { %5248 = vst [vmem:[#allocation14_spill] sm:$0xff] %v4608_v19 }
 0x1a0   :  { %v4610_v20 = vpop.xlane.xlu1 %2166 }
 0x1a1   :  { %5249 = vst [vmem:[#allocation15_spill] sm:$0xff] %v4610_v20  ;;  %2358 = vadd.xlane.f32.xlu1 %v2357_v6 }
 0x1a2   :  { %v4613_v21 = vpop.xlane.xlu0 %2181 }
 0x1a3   :  { %5250 = vst [vmem:[#allocation16_spill] sm:$0xff] %v4613_v21 }
 0x1a4   :  { %v4615_v22 = vpop.xlane.xlu1 %2184 }
 0x1a5   :  { %5251 = vst [vmem:[#allocation17_spill] sm:$0xff] %v4615_v22 }
 0x1a6   :  { %v4617_v3 = vpop.xlane.xlu0 %2175 }
 0x1a7   :  { %5252 = vst [vmem:[#allocation18_spill] sm:$0xff] %v4617_v3 }
 0x1a8   :  { %v4619_v24 = vpop.xlane.xlu1 %2178 }
 0x1a9   :  { %5253 = vst [vmem:[#allocation19_spill] sm:$0xff] %v4619_v24 }
 0x1aa   :  { %v4621_v25 = vpop.xlane.xlu0 %2193 }
 0x1ac   :  { %v4623_v28 = vpop.xlane.xlu1 %2196 }
 0x1ae   :  { %v4625_v30 = vpop.xlane.xlu0 %2187 }
 0x1b0   :  { %v4627_v17 = vpop.xlane.xlu1 %2190 }
 0x1b2   :  { %v4629_v26 = vpop.xlane.xlu0 %2205 }
 0x1b4   :  { %v4631_v45 = vpop.xlane.xlu1 %2208 }
 0x1b6   :  { %v4633_v35 = vpop.xlane.xlu0 %2199 }
 0x1b8   :  { %v4635_v36 = vpop.xlane.xlu1 %2202 }
 0x1ba   :  { %v4637_v37 = vpop.xlane.xlu0 %2217 }
 0x1bb   :  { %5254 = vst [vmem:[#allocation20_spill] sm:$0xff] %v4637_v37 }
 0x1bc   :  { %v4639_v39 = vpop.xlane.xlu1 %2220 }
 0x1bd   :  { %5255 = vst [vmem:[#allocation21_spill] sm:$0xff] %v4639_v39 }
 0x1be   :  { %v4641_v13 = vpop.xlane.xlu0 %2211 }
 0x1c0   :  { %v4643_v40 = vpop.xlane.xlu1 %2214 }
 0x1c1   :  { %5256 = vst [vmem:[#allocation22_spill] sm:$0xff] %v4643_v40 }
 0x1c2   :  { %v4645_v41 = vpop.xlane.xlu0 %2229 }
 0x1c3   :  { %5257 = vst [vmem:[#allocation23_spill] sm:$0xff] %v4645_v41 }
 0x1c4   :  { %v4647_v62 = vpop.xlane.xlu1 %2232 }
 0x1c5   :  { %5258 = vst [vmem:[#allocation24_spill] sm:$0xff] %v4647_v62 }
 0x1c6   :  { %v4649_v43 = vpop.xlane.xlu0 %2223 }
 0x1c7   :  { %5259 = vst [vmem:[#allocation25_spill] sm:$0xff] %v4649_v43 }
 0x1c8   :  { %v4654_v42 = vpop.xlane.xlu1 %2226 }
 0x1c9   :  { %5260 = vst [vmem:[#allocation26_spill] sm:$0xff] %v4654_v42 }
 0x1ca   :  { %v2242_v44 = vpop.xlane.xlu0 %2241 }
 0x1cb   :  { %v2948_v27 = vrot.slane %v2242_v44, %v4668_v53  ;;  %v4686_v44 = vsub.s32 %v2543_v4, %v4147_v12 }
 0x1cc   :  { %v2245_v38 = vpop.xlane.xlu1 %2244 }
 0x1ce   :  { %v2236_v48 = vpop.xlane.xlu0 %2235 }
 0x1cf   :  { %v2939_v55 = vrot.slane %v2236_v48, %v4660_v49 }
 0x1d0   :  { %v2239_v61 = vpop.xlane.xlu1 %2238 }
 0x1d1   :  { %v2943_v58 = vrot.slane %v2239_v61, %v4663_v0  ;;  %v2953_v61 = vrot.slane %v2245_v38, %v4677_v18 }
 0x1d2   :  { %v2254_v63 = vpop.xlane.xlu0 %2253 }
 0x1d3   :  { %v2944_v10 = vsel %vm2520_vm3, %v2943_v58, %v2939_v55 }
 0x1d4   :  { %v2257_v6 = vpop.xlane.xlu1 %2256  ;;  %v2949_v48 = vsel %vm2527_vm4, %v2948_v27, %v2944_v10  ;;  %v2564_v27 = vadd.s32 4294967232, %v4652_v54  ;;  %v2968_v10 = vrot.slane %v2254_v63, %v4690_v52 }
 0x1d5   :  { %v2954_v58 = vsel %vm2534_vm5, %v2953_v61, %v2949_v48  ;;  %v2973_v22 = vrot.slane %v2257_v6, %v4694_v57  ;;  %v4712_v6 = vsub.s32 %v2571_v14, %v4147_v12  ;;  %v2599_v14 = vadd.s32 4294967192, %v4652_v54 }
 0x1d6   :  { %v2248_v24 = vpop.xlane.xlu0 %2247 }
 0x1d7   :  { %v2958_v55 = vrot.slane %v2248_v24, %v4681_v31 }
 0x1d8   :  { %v2251_v3 = vpop.xlane.xlu1 %2250 }
 0x1d9   :  { %v2959_v38 = vsel %vm2541_vm6, %v2958_v55, %v2954_v58  ;;  %v2963_v4 = vrot.slane %v2251_v3, %v4686_v44  ;;  %v2585_v55 = vadd.s32 4294967208, %v4652_v54  ;;  %v4707_v3 = vsub.s32 %v2564_v27, %v4147_v12 }
 0x1da   :  { %v2266_v24 = vpop.xlane.xlu0 %2265  ;;  %v2592_v58 = vadd.s32 4294967200, %v4652_v54 }
 0x1db   :  { %v2964_v48 = vsel %vm2548_vm7, %v2963_v4, %v2959_v38  ;;  %v4716_v4 = vsub.s32 %v2578_v47, %v4147_v12 }
 0x1dc   :  { %v2969_v61 = vsel %vm2555_vm8, %v2968_v10, %v2964_v48  ;;  %v2269_v62 = vpop.xlane.xlu1 %2268  ;;  %v4719_v48 = vsub.s32 %v2585_v55, %v4147_v12 }
 0x1dd   :  { %v2974_v63 = vsel %vm2562_vm9, %v2973_v22, %v2969_v61  ;;  %v4724_v61 = vsub.s32 %v2592_v58, %v4147_v12 }
 0x1de   :  { %v2260_v21 = vpop.xlane.xlu0 %2259  ;;  %v2993_v47 = vrot.slane %v2269_v62, %v4719_v48 }
 0x1df   :  { %v2978_v38 = vrot.slane %v2260_v21, %v4707_v3  ;;  %v2988_v21 = vrot.slane %v2266_v24, %v4716_v4 }
 0x1e0   :  { %v2263_v10 = vpop.xlane.xlu1 %2262 }
 0x1e1   :  { %v2979_v27 = vsel %vm2569_vm10, %v2978_v38, %v2974_v63  ;;  %v2983_v22 = vrot.slane %v2263_v10, %v4712_v6  ;;  %v4734_v38 = vsub.s32 %v2599_v14, %v4147_v12 }
 0x1e3   :  { %v2984_v20 = vsel %vm2576_vm11, %v2983_v22, %v2979_v27  ;;  %v2272_v16 = vpop.xlane.xlu0 %2271 }
 0x1e4   :  { %v2989_v55 = vsel %vm2583_vm12, %v2988_v21, %v2984_v20  ;;  %v2998_v63 = vrot.slane %v2272_v16, %v4724_v61 }
 0x1e5   :  { %v2994_v58 = vsel %vm2590_vm13, %v2993_v47, %v2989_v55 }
 0x1e6   :  { %v2999_v10 = vsel %vm2597_vm14, %v2998_v63, %v2994_v58 }
 0x1e7   :  { %v2275_v24 = vpop.xlane.xlu0 %2274 }
 0x1e8   :  { %v3003_v19 = vrot.slane %v2275_v24, %v4734_v38 }
 0x1ea   :  { %v4739_v62 = vsel %vm2604_vm15, %v3003_v19, %v2999_v10  ;;  %v2290_v27 = vpop.xlane.xlu1 %2289 }
 0x1eb   :  { %5261 = vst [vmem:[#allocation27_spill] sm:$0xff] %v4739_v62  ;;  %v3027_v14 = vrot.slane %v2290_v27, %v4668_v53 }
 0x1ec   :  { %v2293_v22 = vpop.xlane.xlu0 %2292 }
 0x1ed   :  { %v3032_v55 = vrot.slane %v2293_v22, %v4677_v18 }
 0x1ee   :  { %v2284_v20 = vpop.xlane.xlu1 %2283 }
 0x1ef   :  { %v3018_v16 = vrot.slane %v2284_v20, %v4660_v49 }
 0x1f0   :  { %v2287_v21 = vpop.xlane.xlu0 %2286 }
 0x1f1   :  { %v3022_v47 = vrot.slane %v2287_v21, %v4663_v0 }
 0x1f3   :  { %v3023_v63 = vsel %vm2520_vm3, %v3022_v47, %v3018_v16 }
 0x1f4   :  { %v3028_v58 = vsel %vm2527_vm4, %v3027_v14, %v3023_v63  ;;  %v2302_v24 = vpop.xlane.xlu0 %2301 }
 0x1f5   :  { %v3033_v19 = vsel %vm2534_vm5, %v3032_v55, %v3028_v58  ;;  %v3047_v14 = vrot.slane %v2302_v24, %v4690_v52 }
 0x1f8   :  { %v2296_v10 = vpop.xlane.xlu0 %2295 }
 0x1f9   :  { %v3037_v62 = vrot.slane %v2296_v10, %v4681_v31  ;;  %v455_v15 = vpop.f32.mrb[2].mxu0 }
 0x1fa   :  { %v462_v20 = vsel %vm461_vm1, %v455_v15, 0.0  ;;  %v3547_v41 = vpop.f32.mrb[3].mxu0 }
 0x1fb   :  { %v3038_v21 = vsel %vm2541_vm6, %v3037_v62, %v3033_v19  ;;  %463 = vst [vmem:[#allocation2] sm:$0xff] %v462_v20 }
 0x1fc   :  { %v2305_v27 = vpop.xlane.xlu0 %2304 }
 0x1fd   :  { %v3052_v58 = vrot.slane %v2305_v27, %v4694_v57 }
 0x200   :  { %v2299_v22 = vpop.xlane.xlu0 %2298 }
 0x201   :  { %v3042_v16 = vrot.slane %v2299_v22, %v4686_v44  ;;  %v3554_v47 = vpop.f32.mrb[4].mxu0 }
 0x202   :  { %v1147_v55 = vadd.f32 %v4535_v46, %v3554_v47  ;;  %v1138_v63 = vpop.f32.mrb[5].mxu0 }
 0x203   :  { %v3043_v10 = vsel %vm2548_vm7, %v3042_v16, %v3038_v21  ;;  %v1139_v15 = vadd.f32 %v4535_v46, %v1138_v63  ;;  %v3555_v41 = vpop.f32.mrb[6].mxu0  ;;  %v4763_v9 = vpop.xlane.xlu1 %2319 }
 0x204   :  { %v3048_v62 = vsel %vm2555_vm8, %v3047_v14, %v3043_v10  ;;  %v1651_v19 = vmax.f32 %v1147_v55, 0.0  ;;  %v1150_v20 = vadd.f32 %v4535_v46, %v3555_v41  ;;  %v4759_v8 = vpop.xlane.xlu0 %2313  ;;  %v1141_v22 = vpop.f32.mrb[7].mxu0 }
 0x205   :  { %v1649_v24 = vmax.f32 %v1139_v15, 0.0  ;;  %v1142_v47 = vadd.f32 %v4535_v46, %v1141_v22  ;;  %v3053_v27 = vsel %vm2562_vm9, %v3052_v58, %v3048_v62 }
 0x206   :  { %v1652_v21 = vmax.f32 %v1150_v20, 0.0  ;;  %v1868_v16 = vmul.f32 %v4176_v50, %v1651_v19 }
 0x207   :  { %v1650_v63 = vmax.f32 %v1142_v47, 0.0  ;;  %v1866_v14 = vmul.f32 %v4176_v50, %v1649_v24 }
 0x208   :  { %v2308_v55 = vpop.xlane.xlu0 %2307  ;;  %v2000_v10 = vsel %vm46_vm0, %v1868_v16, 0.0  ;;  %v1869_v41 = vmul.f32 %v4176_v50, %v1652_v21 }
 0x209   :  { %v3057_v1 = vrot.slane %v2308_v55, %v4707_v3  ;;  %2001 = vadd.xlane.f32.xlu1 %v2000_v10  ;;  %v3558_v15 = vpop.f32.mrb[8].mxu0  ;;  %v1994_v22 = vsel %vm46_vm0, %v1866_v14, 0.0  ;;  %v1867_v58 = vmul.f32 %v4176_v50, %v1650_v63 }
 0x20a   :  { %v1163_v62 = vadd.f32 %v4535_v46, %v3558_v15  ;;  %v4773_v20 = vpop.xlane.xlu1 %2337  ;;  %v1154_v19 = vpop.f32.mrb[9].mxu0  ;;  %1995 = vadd.xlane.f32.xlu0 %v1994_v22  ;;  %v2003_v14 = vsel %vm46_vm0, %v1869_v41, 0.0  ;;  %v3077_v41 = vrot.slane %v4763_v9, %v4724_v61 }
 0x20b   :  { %v3058_v24 = vsel %vm2569_vm10, %v3057_v1, %v3053_v27  ;;  %v1155_v47 = vadd.f32 %v4535_v46, %v1154_v19  ;;  %v3559_v16 = vpop.f32.mrb[10].mxu0  ;;  %v1997_v15 = vsel %vm46_vm0, %v1867_v58, 0.0 }
 0x20c   :  { %v1655_v21 = vmax.f32 %v1163_v62, 0.0  ;;  %v1166_v55 = vadd.f32 %v4535_v46, %v3559_v16  ;;  %v2317_v10 = vpop.xlane.xlu0 %2316  ;;  %v1157_v33 = vpop.f32.mrb[11].mxu0 }
 0x20d   :  { %v1653_v42 = vmax.f32 %v1155_v47, 0.0  ;;  %v1158_v63 = vadd.f32 %v4535_v46, %v1157_v33  ;;  %2004 = vadd.xlane.f32.xlu1 %v2003_v14  ;;  %v3072_v9 = vrot.slane %v2317_v10, %v4719_v48 }
 0x20e   :  { %v1656_v39 = vmax.f32 %v1166_v55, 0.0  ;;  %v2341_v22 = vpop.xlane.xlu1 %2340  ;;  %1998 = vadd.xlane.f32.xlu0 %v1997_v15  ;;  %v1872_v27 = vmul.f32 %v4176_v50, %v1655_v21  ;;  %v3067_v55 = vrot.slane %v4759_v8, %v4716_v4  ;;  %v3106_v21 = vrot.slane %v4773_v20, %v4668_v53 }
 0x20f   :  { %v1654_v1 = vmax.f32 %v1158_v63, 0.0  ;;  %v1870_v62 = vmul.f32 %v4176_v50, %v1653_v42 }
 0x210   :  { %v2311_v19 = vpop.xlane.xlu0 %2310  ;;  %v2012_v16 = vsel %vm46_vm0, %v1872_v27, 0.0  ;;  %v1873_v43 = vmul.f32 %v4176_v50, %v1656_v39 }
 0x211   :  { %v3062_v33 = vrot.slane %v2311_v19, %v4712_v6  ;;  %v3562_v47 = vpop.f32.mrb[12].mxu0  ;;  %v1871_v58 = vmul.f32 %v4176_v50, %v1654_v1  ;;  %v2006_v8 = vsel %vm46_vm0, %v1870_v62, 0.0 }
 0x212   :  { %v1179_v42 = vadd.f32 %v4535_v46, %v3562_v47  ;;  %v2335_v14 = vpop.xlane.xlu1 %2334  ;;  %v1170_v63 = vpop.f32.mrb[13].mxu0  ;;  %2013 = vadd.xlane.f32.xlu0 %v2012_v16  ;;  %v2015_v39 = vsel %vm46_vm0, %v1873_v43, 0.0 }
 0x213   :  { %v3063_v15 = vsel %vm2576_vm11, %v3062_v33, %v3058_v24  ;;  %v1171_v27 = vadd.f32 %v4535_v46, %v1170_v63  ;;  %2016 = vadd.xlane.f32.xlu1 %v2015_v39  ;;  %v3563_v1 = vpop.f32.mrb[14].mxu0  ;;  %v3101_v47 = vrot.slane %v2335_v14, %v4663_v0  ;;  %v2009_v62 = vsel %vm46_vm0, %v1871_v58, 0.0 }
 0x214   :  { %v3068_v19 = vsel %vm2583_vm12, %v3067_v55, %v3063_v15  ;;  %v1659_v20 = vmax.f32 %v1179_v42, 0.0  ;;  %v1182_v37 = vadd.f32 %v4535_v46, %v3563_v1  ;;  %v2332_v16 = vpop.xlane.xlu0 %2331  ;;  %v1173_v40 = vpop.f32.mrb[15].mxu0  ;;  %v3111_v14 = vrot.slane %v2341_v22, %v4677_v18 }
 0x215   :  { %v1657_v43 = vmax.f32 %v1171_v27, 0.0  ;;  %v3097_v10 = vrot.slane %v2332_v16, %v4660_v49  ;;  %v1174_v24 = vadd.f32 %v4535_v46, %v1173_v40  ;;  %v3073_v33 = vsel %vm2590_vm13, %v3072_v9, %v3068_v19 }
 0x216   :  { %v1660_v63 = vmax.f32 %v1182_v37, 0.0  ;;  %v4805_v39 = vpop.xlane.xlu1 %2349  ;;  %2007 = vadd.xlane.f32.xlu0 %v2006_v8  ;;  %v1876_v55 = vmul.f32 %v4176_v50, %v1659_v20  ;;  %v4810_v42 = vsel %vm2597_vm14, %v3077_v41, %v3073_v33 }
 0x217   :  { %v3102_v15 = vsel %vm2520_vm3, %v3101_v47, %v3097_v10  ;;  %v1658_v27 = vmax.f32 %v1174_v24, 0.0  ;;  %2010 = vadd.xlane.f32.xlu1 %v2009_v62  ;;  %v1874_v40 = vmul.f32 %v4176_v50, %v1657_v43 }
 0x218   :  { %v3107_v37 = vsel %vm2527_vm4, %v3106_v21, %v3102_v15  ;;  %v2024_v9 = vsel %vm46_vm0, %v1876_v55, 0.0  ;;  %v1877_v1 = vmul.f32 %v4176_v50, %v1660_v63 }
 0x219   :  { %v3566_v58 = vpop.f32.mrb[16].mxu0  ;;  %v3112_v8 = vsel %vm2534_vm5, %v3111_v14, %v3107_v37  ;;  %v1875_v41 = vmul.f32 %v4176_v50, %v1658_v27  ;;  %v2018_v14 = vsel %vm46_vm0, %v1874_v40, 0.0 }
 0x21a   :  { %v1195_v19 = vadd.f32 %v4535_v46, %v3566_v58  ;;  %v2344_v22 = vpop.xlane.xlu1 %2343  ;;  %v1186_v20 = vpop.f32.mrb[17].mxu0  ;;  %2025 = vadd.xlane.f32.xlu0 %v2024_v9  ;;  %v2027_v47 = vsel %vm46_vm0, %v1877_v1, 0.0 }
 0x21b   :  { %v3116_v16 = vrot.slane %v2344_v22, %v4681_v31  ;;  %v1187_v21 = vadd.f32 %v4535_v46, %v1186_v20  ;;  %v3567_v43 = vpop.f32.mrb[18].mxu0  ;;  %2028 = vadd.xlane.f32.xlu1 %v2027_v47  ;;  %v2021_v37 = vsel %vm46_vm0, %v1875_v41, 0.0 }
 0x21c   :  { %v1663_v10 = vmax.f32 %v1195_v19, 0.0  ;;  %v1198_v24 = vadd.f32 %v4535_v46, %v3567_v43  ;;  %v1189_v33 = vpop.f32.mrb[19].mxu0 }
 0x21d   :  { %v3117_v63 = vsel %vm2541_vm6, %v3116_v16, %v3112_v8  ;;  %v1661_v62 = vmax.f32 %v1187_v21, 0.0  ;;  %v1190_v55 = vadd.f32 %v4535_v46, %v1189_v33 }
 0x21e   :  { %v1664_v15 = vmax.f32 %v1198_v24, 0.0  ;;  %v2353_v27 = vpop.xlane.xlu1 %2352  ;;  %2019 = vadd.xlane.f32.xlu0 %v2018_v14  ;;  %v1880_v9 = vmul.f32 %v4176_v50, %v1663_v10  ;;  %v3126_v24 = vrot.slane %v4805_v39, %v4690_v52 }
 0x21f   :  { %v1662_v1 = vmax.f32 %v1190_v55, 0.0  ;;  %2022 = vadd.xlane.f32.xlu1 %v2021_v37  ;;  %v1878_v58 = vmul.f32 %v4176_v50, %v1661_v62  ;;  %v3131_v33 = vrot.slane %v2353_v27, %v4694_v57 }
 0x220   :  { %v2036_v19 = vsel %vm46_vm0, %v1880_v9, 0.0  ;;  %v1881_v8 = vmul.f32 %v4176_v50, %v1664_v15 }
 0x221   :  { %v3570_v22 = vpop.f32.mrb[20].mxu0  ;;  %v1879_v20 = vmul.f32 %v4176_v50, %v1662_v1  ;;  %v2030_v9 = vsel %vm46_vm0, %v1878_v58, 0.0 }
 0x222   :  { %v1211_v40 = vadd.f32 %v4535_v46, %v3570_v22  ;;  %v2347_v47 = vpop.xlane.xlu1 %2346  ;;  %v1202_v16 = vpop.f32.mrb[21].mxu0  ;;  %2037 = vadd.xlane.f32.xlu0 %v2036_v19  ;;  %v2039_v41 = vsel %vm46_vm0, %v1881_v8, 0.0 }
 0x223   :  { %v3121_v21 = vrot.slane %v2347_v47, %v4686_v44  ;;  %v1203_v43 = vadd.f32 %v4535_v46, %v1202_v16  ;;  %v3571_v10 = vpop.f32.mrb[22].mxu0  ;;  %2040 = vadd.xlane.f32.xlu1 %v2039_v41  ;;  %v2033_v39 = vsel %vm46_vm0, %v1879_v20, 0.0 }
 0x224   :  { %v1667_v62 = vmax.f32 %v1211_v40, 0.0  ;;  %v1214_v50 = vadd.f32 %v4535_v46, %v3571_v10  ;;  %v1205_v55 = vpop.f32.mrb[23].mxu0 }
 0x225   :  { %v3122_v14 = vsel %vm2548_vm7, %v3121_v21, %v3117_v63  ;;  %v1665_v15 = vmax.f32 %v1203_v43, 0.0  ;;  %v1206_v37 = vadd.f32 %v4535_v46, %v1205_v55 }
 0x226   :  { %v3127_v1 = vsel %vm2555_vm8, %v3126_v24, %v3122_v14  ;;  %v1668_v19 = vmax.f32 %v1214_v50, 0.0  ;;  %v2362_v8 = vpop.xlane.xlu1 %2361  ;;  %2031 = vadd.xlane.f32.xlu0 %v2030_v9  ;;  %v1884_v27 = vmul.f32 %v4185_v56, %v1667_v62 }
 0x227   :  { %v1666_v22 = vmax.f32 %v1206_v37, 0.0  ;;  %2034 = vadd.xlane.f32.xlu1 %v2033_v39  ;;  %v3132_v40 = vsel %vm2562_vm9, %v3131_v33, %v3127_v1  ;;  %v1882_v63 = vmul.f32 %v4185_v56, %v1665_v15 }
 0x228   :  { %v2048_v47 = vsel %vm46_vm0, %v1884_v27, 0.0  ;;  %v1885_v16 = vmul.f32 %v4185_v56, %v1668_v19 }
 0x229   :  { %v3574_v58 = vpop.f32.mrb[24].mxu0  ;;  %v1883_v41 = vmul.f32 %v4185_v56, %v1666_v22  ;;  %v2042_v1 = vsel %vm46_vm0, %v1882_v63, 0.0 }
 0x22a   :  { %v1227_v21 = vadd.f32 %v4535_v46, %v3574_v58  ;;  %v2356_v43 = vpop.xlane.xlu1 %2355  ;;  %v1218_v10 = vpop.f32.mrb[25].mxu0  ;;  %2049 = vadd.xlane.f32.xlu0 %v2048_v47  ;;  %v2051_v20 = vsel %vm46_vm0, %v1885_v16, 0.0 }
 0x22b   :  { %v3136_v24 = vrot.slane %v2356_v43, %v4707_v3  ;;  %v1219_v33 = vadd.f32 %v4535_v46, %v1218_v10  ;;  %v3575_v62 = vpop.f32.mrb[26].mxu0  ;;  %2052 = vadd.xlane.f32.xlu1 %v2051_v20  ;;  %v2045_v27 = vsel %vm46_vm0, %v1883_v41, 0.0 }
 0x22c   :  { %v1671_v50 = vmax.f32 %v1227_v21, 0.0  ;;  %v1230_v55 = vadd.f32 %v4535_v46, %v3575_v62  ;;  %v1221_v14 = vpop.f32.mrb[27].mxu0 }
 0x22d   :  { %v3137_v15 = vsel %vm2569_vm10, %v3136_v24, %v3132_v40  ;;  %v1669_v37 = vmax.f32 %v1219_v33, 0.0  ;;  %v1222_v9 = vadd.f32 %v4535_v46, %v1221_v14  ;;  %v3146_v40 = vrot.slane %v2362_v8, %v4716_v4 }
 0x22e   :  { %v1672_v19 = vmax.f32 %v1230_v55, 0.0  ;;  %v2359_v39 = vpop.xlane.xlu1 %2358  ;;  %2043 = vadd.xlane.f32.xlu0 %v2042_v1  ;;  %v1888_v22 = vmul.f32 %v4185_v56, %v1671_v50 }
 0x22f   :  { %v1670_v47 = vmax.f32 %v1222_v9, 0.0  ;;  %v3141_v16 = vrot.slane %v2359_v39, %v4712_v6  ;;  %2046 = vadd.xlane.f32.xlu1 %v2045_v27  ;;  %v1886_v58 = vmul.f32 %v4185_v56, %v1669_v37 }
 0x230   :  { %v2060_v21 = vsel %vm46_vm0, %v1888_v22, 0.0  ;;  %v1889_v43 = vmul.f32 %v4185_v56, %v1672_v19 }
 0x231   :  { %v3142_v63 = vsel %vm2576_vm11, %v3141_v16, %v3137_v15  ;;  %v3578_v10 = vpop.f32.mrb[28].mxu0  ;;  %v1887_v20 = vmul.f32 %v4185_v56, %v1670_v47  ;;  %v2054_v1 = vsel %vm46_vm0, %v1886_v58, 0.0 }
 0x232   :  { %v4871_v41 = vsel %vm2583_vm12, %v3146_v40, %v3142_v63  ;;  %v1243_v24 = vadd.f32 %v4535_v46, %v3578_v10  ;;  %v1234_v33 = vpop.f32.mrb[29].mxu0  ;;  %2061 = vadd.xlane.f32.xlu0 %v2060_v21  ;;  %v2063_v62 = vsel %vm46_vm0, %v1889_v43, 0.0 }
 0x233   :  { %v1235_v8 = vadd.f32 %v4535_v46, %v1234_v33  ;;  %v3579_v50 = vpop.f32.mrb[30].mxu0  ;;  %2064 = vadd.xlane.f32.xlu1 %v2063_v62  ;;  %v2057_v39 = vsel %vm46_vm0, %v1887_v20, 0.0 }
 0x234   :  { %v1675_v55 = vmax.f32 %v1243_v24, 0.0  ;;  %v1246_v14 = vadd.f32 %v4535_v46, %v3579_v50  ;;  %v1237_v15 = vpop.f32.mrb[31].mxu0 }
 0x235   :  { %v1673_v37 = vmax.f32 %v1235_v8, 0.0  ;;  %v1238_v9 = vadd.f32 %v4535_v46, %v1237_v15 }
 0x236   :  { %v1676_v19 = vmax.f32 %v1246_v14, 0.0  ;;  %2055 = vadd.xlane.f32.xlu0 %v2054_v1  ;;  %v1892_v27 = vmul.f32 %v4185_v56, %v1675_v55 }
 0x237   :  { %v1674_v22 = vmax.f32 %v1238_v9, 0.0  ;;  %2058 = vadd.xlane.f32.xlu1 %v2057_v39  ;;  %v1890_v47 = vmul.f32 %v4185_v56, %v1673_v37 }
 0x238   :  { %v2072_v16 = vsel %vm46_vm0, %v1892_v27, 0.0  ;;  %v1893_v40 = vmul.f32 %v4185_v56, %v1676_v19 }
 0x239   :  { %v3582_v21 = vpop.f32.mrb[32].mxu0  ;;  %v1891_v43 = vmul.f32 %v4185_v56, %v1674_v22  ;;  %v2066_v14 = vsel %vm46_vm0, %v1890_v47, 0.0 }
 0x23a   :  { %v1259_v63 = vadd.f32 %v4535_v46, %v3582_v21  ;;  %v1250_v58 = vpop.f32.mrb[33].mxu0  ;;  %2073 = vadd.xlane.f32.xlu0 %v2072_v16  ;;  %v2075_v10 = vsel %vm46_vm0, %v1893_v40, 0.0 }
 0x23b   :  { %v1251_v20 = vadd.f32 %v4535_v46, %v1250_v58  ;;  %v3583_v24 = vpop.f32.mrb[34].mxu0  ;;  %2076 = vadd.xlane.f32.xlu1 %v2075_v10  ;;  %v2069_v37 = vsel %vm46_vm0, %v1891_v43, 0.0 }
 0x23c   :  { %v1679_v33 = vmax.f32 %v1259_v63, 0.0  ;;  %v1262_v62 = vadd.f32 %v4535_v46, %v3583_v24  ;;  %v1253_v8 = vpop.f32.mrb[35].mxu0 }
 0x23d   :  { %v1677_v50 = vmax.f32 %v1251_v20, 0.0  ;;  %v1254_v55 = vadd.f32 %v4535_v46, %v1253_v8 }
 0x23e   :  { %v1680_v15 = vmax.f32 %v1262_v62, 0.0  ;;  %2067 = vadd.xlane.f32.xlu0 %v2066_v14  ;;  %v1896_v9 = vmul.f32 %v4185_v56, %v1679_v33 }
 0x23f   :  { %v1894_v1 = vmul.f32 %v4185_v56, %v1677_v50  ;;  %v1678_v19 = vmax.f32 %v1254_v55, 0.0  ;;  %2070 = vadd.xlane.f32.xlu1 %v2069_v37 }
 0x240   :  { %v2084_v39 = vsel %vm46_vm0, %v1896_v9, 0.0  ;;  %v1897_v27 = vmul.f32 %v4185_v56, %v1680_v15 }
 0x241   :  { %v3586_v22 = vpop.f32.mrb[36].mxu0  ;;  %v1895_v16 = vmul.f32 %v4185_v56, %v1678_v19  ;;  %v2078_v62 = vsel %vm46_vm0, %v1894_v1, 0.0 }
 0x242   :  { %v1275_v40 = vadd.f32 %v4535_v46, %v3586_v22  ;;  %v1266_v47 = vpop.f32.mrb[37].mxu0  ;;  %2085 = vadd.xlane.f32.xlu0 %v2084_v39  ;;  %v2087_v21 = vsel %vm46_vm0, %v1897_v27, 0.0 }
 0x243   :  { %v1267_v43 = vadd.f32 %v4535_v46, %v1266_v47  ;;  %v3587_v63 = vpop.f32.mrb[38].mxu0  ;;  %2088 = vadd.xlane.f32.xlu1 %v2087_v21  ;;  %v2081_v50 = vsel %vm46_vm0, %v1895_v16, 0.0 }
 0x244   :  { %v1683_v58 = vmax.f32 %v1275_v40, 0.0  ;;  %v1278_v10 = vadd.f32 %v4535_v46, %v3587_v63  ;;  %v1269_v20 = vpop.f32.mrb[39].mxu0 }
 0x245   :  { %v1681_v24 = vmax.f32 %v1267_v43, 0.0  ;;  %v1270_v33 = vadd.f32 %v4535_v46, %v1269_v20 }
 0x246   :  { %v1900_v56 = vmul.f32 %v4189_v59, %v1683_v58  ;;  %v1684_v8 = vmax.f32 %v1278_v10, 0.0  ;;  %2079 = vadd.xlane.f32.xlu0 %v2078_v62 }
 0x247   :  { %v1898_v55 = vmul.f32 %v4189_v59, %v1681_v24  ;;  %v1682_v14 = vmax.f32 %v1270_v33, 0.0  ;;  %2082 = vadd.xlane.f32.xlu1 %v2081_v50 }
 0x248   :  { %v1901_v15 = vmul.f32 %v4189_v59, %v1684_v8  ;;  %v2096_v37 = vsel %vm46_vm0, %v1900_v56, 0.0 }
 0x249   :  { %v1899_v9 = vmul.f32 %v4189_v59, %v1682_v14  ;;  %v3590_v19 = vpop.f32.mrb[40].mxu0  ;;  %v2090_v58 = vsel %vm46_vm0, %v1898_v55, 0.0 }
 0x24a   :  { %v1291_v39 = vadd.f32 %v4535_v46, %v3590_v19  ;;  %v1282_v1 = vpop.f32.mrb[41].mxu0  ;;  %2097 = vadd.xlane.f32.xlu0 %v2096_v37  ;;  %v2099_v27 = vsel %vm46_vm0, %v1901_v15, 0.0 }
 0x24b   :  { %v1283_v22 = vadd.f32 %v4535_v46, %v1282_v1  ;;  %v3591_v16 = vpop.f32.mrb[42].mxu0  ;;  %2100 = vadd.xlane.f32.xlu1 %v2099_v27  ;;  %v2093_v24 = vsel %vm46_vm0, %v1899_v9, 0.0 }
 0x24c   :  { %v1687_v40 = vmax.f32 %v1291_v39, 0.0  ;;  %v1294_v47 = vadd.f32 %v4535_v46, %v3591_v16  ;;  %v1285_v21 = vpop.f32.mrb[43].mxu0  ;;  %v3805_v16 = vld [vmem:[%s5237_s7] ss:$0 sm:$0xff] }
 0x24d   :  { %v1685_v43 = vmax.f32 %v1283_v22, 0.0  ;;  %v1286_v63 = vadd.f32 %v4535_v46, %v1285_v21 }
 0x24e   :  { %v1904_v10 = vmul.f32 %v4189_v59, %v1687_v40  ;;  %v1688_v20 = vmax.f32 %v1294_v47, 0.0  ;;  %2091 = vadd.xlane.f32.xlu0 %v2090_v58 }
 0x24f   :  { %v1902_v33 = vmul.f32 %v4189_v59, %v1685_v43  ;;  %v1686_v62 = vmax.f32 %v1286_v63, 0.0  ;;  %2094 = vadd.xlane.f32.xlu1 %v2093_v24 }
 0x250   :  { %v1905_v56 = vmul.f32 %v4189_v59, %v1688_v20  ;;  %v2108_v8 = vsel %vm46_vm0, %v1904_v10, 0.0 }
 0x251   :  { %v1903_v50 = vmul.f32 %v4189_v59, %v1686_v62  ;;  %v3594_v14 = vpop.f32.mrb[44].mxu0  ;;  %v2102_v47 = vsel %vm46_vm0, %v1902_v33, 0.0 }
 0x252   :  { %v1307_v15 = vadd.f32 %v4535_v46, %v3594_v14  ;;  %v1298_v55 = vpop.f32.mrb[45].mxu0  ;;  %2109 = vadd.xlane.f32.xlu0 %v2108_v8  ;;  %v2111_v37 = vsel %vm46_vm0, %v1905_v56, 0.0 }
 0x253   :  { %v1299_v19 = vadd.f32 %v4535_v46, %v1298_v55  ;;  %v3595_v9 = vpop.f32.mrb[46].mxu0  ;;  %2112 = vadd.xlane.f32.xlu1 %v2111_v37  ;;  %v2105_v63 = vsel %vm46_vm0, %v1903_v50, 0.0 }
 0x254   :  { %v1691_v39 = vmax.f32 %v1307_v15, 0.0  ;;  %v1310_v1 = vadd.f32 %v4535_v46, %v3595_v9  ;;  %v1301_v27 = vpop.f32.mrb[47].mxu0 }
 0x255   :  { %v1689_v22 = vmax.f32 %v1299_v19, 0.0  ;;  %v1302_v40 = vadd.f32 %v3805_v16, %v1301_v27 }
 0x256   :  { %v1908_v21 = vmul.f32 %v4189_v59, %v1691_v39  ;;  %v1692_v43 = vmax.f32 %v1310_v1, 0.0  ;;  %2103 = vadd.xlane.f32.xlu0 %v2102_v47 }
 0x257   :  { %v1906_v58 = vmul.f32 %v4189_v59, %v1689_v22  ;;  %v1690_v10 = vmax.f32 %v1302_v40, 0.0  ;;  %2106 = vadd.xlane.f32.xlu1 %v2105_v63 }
 0x258   :  { %v1909_v46 = vmul.f32 %v4189_v59, %v1692_v43  ;;  %v2120_v20 = vsel %vm46_vm0, %v1908_v21, 0.0 }
 0x259   :  { %v1907_v24 = vmul.f32 %v4189_v59, %v1690_v10  ;;  %v3598_v62 = vpop.f32.mrb[48].mxu0  ;;  %v2114_v39 = vsel %vm46_vm0, %v1906_v58, 0.0 }
 0x25a   :  { %v1323_v56 = vadd.f32 %v3805_v16, %v3598_v62  ;;  %v1314_v8 = vpop.f32.mrb[49].mxu0  ;;  %2121 = vadd.xlane.f32.xlu0 %v2120_v20  ;;  %v2123_v33 = vsel %vm46_vm0, %v1909_v46, 0.0 }
 0x25b   :  { %v1315_v14 = vadd.f32 %v3805_v16, %v1314_v8  ;;  %v3599_v15 = vpop.f32.mrb[50].mxu0  ;;  %2124 = vadd.xlane.f32.xlu1 %v2123_v33  ;;  %v2117_v22 = vsel %vm46_vm0, %v1907_v24, 0.0 }
 0x25c   :  { %v1695_v50 = vmax.f32 %v1323_v56, 0.0  ;;  %v1326_v55 = vadd.f32 %v3805_v16, %v3599_v15  ;;  %v1317_v37 = vpop.f32.mrb[51].mxu0 }
 0x25d   :  { %v1693_v19 = vmax.f32 %v1315_v14, 0.0  ;;  %v1318_v9 = vadd.f32 %v3805_v16, %v1317_v37 }
 0x25e   :  { %v1912_v1 = vmul.f32 %v4189_v59, %v1695_v50  ;;  %v1696_v27 = vmax.f32 %v1326_v55, 0.0  ;;  %2115 = vadd.xlane.f32.xlu0 %v2114_v39 }
 0x25f   :  { %v1910_v40 = vmul.f32 %v4189_v59, %v1693_v19  ;;  %v1694_v47 = vmax.f32 %v1318_v9, 0.0  ;;  %2118 = vadd.xlane.f32.xlu1 %v2117_v22 }
 0x260   :  { %v1913_v21 = vmul.f32 %v4189_v59, %v1696_v27  ;;  %v2132_v43 = vsel %vm46_vm0, %v1912_v1, 0.0 }
 0x261   :  { %v1911_v63 = vmul.f32 %v4189_v59, %v1694_v47  ;;  %v3602_v10 = vpop.f32.mrb[52].mxu0  ;;  %v2126_v50 = vsel %vm46_vm0, %v1910_v40, 0.0  ;;  %v2321_v47 = vsel %vm46_vm0, %v4510_v34, 0.0  ;;  %v2324_v34 = vsel %vm46_vm0, %v4496_v23, 0.0 }
 0x262   :  { %v1339_v46 = vadd.f32 %v3805_v16, %v3602_v10  ;;  %v1330_v20 = vpop.f32.mrb[53].mxu0  ;;  %2133 = vadd.xlane.f32.xlu0 %v2132_v43  ;;  %v2135_v58 = vsel %vm46_vm0, %v1913_v21, 0.0  ;;  %v2276_v21 = vsel %vm46_vm0, %v4416_v51, 0.0  ;;  %v2366_v43 = vsel %vm46_vm0, %v4587_v5, 0.0  ;;  %v4975_v10 = vpop.xlane.xlu0 %2364 }
 0x263   :  { %v1331_v62 = vadd.f32 %v3805_v16, %v1330_v20  ;;  %v3603_v56 = vpop.f32.mrb[54].mxu0  ;;  %2136 = vadd.xlane.f32.xlu1 %v2135_v58  ;;  %v2129_v59 = vsel %vm46_vm0, %v1911_v63, 0.0  ;;  %v2369_v63 = vsel %vm46_vm0, %v4596_v11, 0.0  ;;  %v2372_v51 = vsel %vm46_vm0, %v4582_v2, 0.0  ;;  %v2378_v11 = vld [vmem:[%s5232_s2] sm:$0xff] }
 0x264   :  { %v1699_v24 = vmax.f32 %v1339_v46, 0.0  ;;  %v1342_v8 = vadd.f32 %v3805_v16, %v3603_v56  ;;  %v1333_v33 = vpop.f32.mrb[55].mxu0  ;;  %v2375_v5 = vsel %vm46_vm0, %v4590_v7, 0.0 }
 0x265   :  { %v1697_v14 = vmax.f32 %v1331_v62, 0.0  ;;  %v1334_v15 = vadd.f32 %v3805_v16, %v1333_v33 }
 0x266   :  { %v1916_v55 = vmul.f32 %v4215_v29, %v1699_v24  ;;  %v1700_v37 = vmax.f32 %v1342_v8, 0.0  ;;  %2127 = vadd.xlane.f32.xlu0 %v2126_v50 }
 0x267   :  { %v1698_v19 = vmax.f32 %v1334_v15, 0.0  ;;  %2130 = vadd.xlane.f32.xlu1 %v2129_v59  ;;  %v1914_v1 = vmul.f32 %v4215_v29, %v1697_v14 }
 0x268   :  { %v1917_v9 = vmul.f32 %v4215_v29, %v1700_v37  ;;  %v2144_v39 = vsel %vm46_vm0, %v1916_v55, 0.0 }
 0x269   :  { %v1915_v27 = vmul.f32 %v4215_v29, %v1698_v19  ;;  %v2138_v22 = vsel %vm46_vm0, %v1914_v1, 0.0  ;;  %v2279_v29 = vsel %vm46_vm0, %v4427_v60, 0.0  ;;  %v2327_v60 = vsel %vm46_vm0, %v4507_v32, 0.0 }
 0x26a   :  { %2145 = vadd.xlane.f32.xlu0 %v2144_v39  ;;  %v2147_v16 = vsel %vm46_vm0, %v1917_v9, 0.0 }
 0x26b   :  { %2148 = vadd.xlane.f32.xlu1 %v2147_v16  ;;  %v2141_v40 = vsel %vm46_vm0, %v1915_v27, 0.0 }
 0x26e   :  { %2139 = vadd.xlane.f32.xlu0 %v2138_v22 }
 0x26f   :  { %2142 = vadd.xlane.f32.xlu1 %v2141_v40 }
 0x272   :  { %2322 = vadd.xlane.f32.xlu0 %v2321_v47 }
 0x273   :  { %2277 = vadd.xlane.f32.xlu1 %v2276_v21 }
 0x276   :  { %2280 = vadd.xlane.f32.xlu0 %v2279_v29 }
 0x277   :  { %2367 = vadd.xlane.f32.xlu1 %v2366_v43 }
 0x27a   :  { %2370 = vadd.xlane.f32.xlu0 %v2369_v63 }
 0x27b   :  { %2325 = vadd.xlane.f32.xlu1 %v2324_v34 }
 0x27e   :  { %2373 = vadd.xlane.f32.xlu0 %v2372_v51 }
 0x27f   :  { %2328 = vadd.xlane.f32.xlu1 %v2327_v60 }
 0x283   :  { %2376 = vadd.xlane.f32.xlu1 %v2375_v5 }
 0x294   :  { %2380 = vperm.xlu0 %3729, %v2378_v11  }
 0x296   :  { %v2002_v23 = vpop.xlane.xlu1 %2001 }
 0x297   :  { %v1996_v2 = vpop.xlane.xlu0 %1995 }
 0x298   :  { %3817 = shalt.err (!%p3814_p4)
}
 0x299   :  { %s3818_s26 = scalar_lea.hbm %s5238_s8, 128 }
 0x29a   :  { %p3819_p5 = scmp.ne.s32.totalorder %s5238_s8, %s3818_s26  ;;  %p3822_p6 = scmp.lt.u32.totalorder %s3818_s26, %s5238_s8 }
 0x29c   :  { %p3824_p7 = pnand %p3822_p6, %p3819_p5 }
 0x29e   :  { %3827 = shalt.err (!%p3824_p7)
}
 0x29f   :  { %3199 = dma.vmem_to_hbm [thread:$0]  %s3197_s22, 128, %s5238_s8, [#allocation3]   ;;  %v2005_v32 = vpop.xlane.xlu1 %2004  ;;  %v1999_v7 = vpop.xlane.xlu0 %1998  ;;  %v2514_v46 = vrot.slane %v1996_v2, %v4660_v49  ;;  %v2526_v58 = vrot.slane %v2002_v23, %v4668_v53  ;;  %v2606_v5 = vadd.s32 4294967184, %v4652_v54  ;;  %v2613_v2 = vadd.s32 4294967176, %v4652_v54 }
 0x2a0   :  { %v2519_v20 = vrot.slane %v1999_v7, %v4663_v0  ;;  %v2533_v62 = vrot.slane %v2005_v32, %v4677_v18  ;;  %vm2611_vm0 = vcmask 982912   ;;  %vm2618_vm2 = vcmask 1048512   ;;  %s3860_s8 = smov [#allocation4]  }
 0x2a1   :  { %vm3173_vm1 = vcmask 1041409   ;;  %s3206_s0 = sshll.u32 %s3860_s8, 4  ;;  %s3207_s0 = int_to_ptr.vmem [resolvable:$true] %s3206_s0 }
 0x2a2   :  { %v2521_v56 = vsel %vm2520_vm3, %v2519_v20, %v2514_v46  ;;  %v5015_v46 = vsub.s32 %v2606_v5, %v4147_v12  ;;  %s3828_s10 = scalar_lea.vmem %s3207_s0, 128  ;;  %p3833_p9 = scmp.lt.s32.totalorder %s3207_s0, %s3207_s0 }
 0x2a3   :  { %v2528_v24 = vsel %vm2527_vm4, %v2526_v58, %v2521_v56  ;;  %v2014_v8 = vpop.xlane.xlu0 %2013  ;;  %v2017_v33 = vpop.xlane.xlu1 %2016  ;;  %p3829_p8 = scmp.ne.s32.totalorder %s3207_s0, %s3828_s10  ;;  %p3834_p10 = scmp.lt.s32.totalorder %s3828_s10, %s3828_s10 }
 0x2a4   :  { %v2535_v14 = vsel %vm2534_vm5, %v2533_v62, %v2528_v24  ;;  %v2554_v59 = vrot.slane %v2014_v8, %v4690_v52  ;;  %v2561_v9 = vrot.slane %v2017_v33, %v4694_v57  ;;  %v5019_v62 = vsub.s32 %v2613_v2, %v4147_v12 }
 0x2a5   :  { %p3835_p11 = por %p3834_p10, %p3833_p9 }
 0x2a7   :  { %v2008_v15 = vpop.xlane.xlu0 %2007  ;;  %v2011_v55 = vpop.xlane.xlu1 %2010  ;;  %p3836_p12 = pnand %p3835_p11, %p3829_p8 }
 0x2a8   :  { %v2540_v50 = vrot.slane %v2008_v15, %v4681_v31  ;;  %v2547_v37 = vrot.slane %v2011_v55, %v4686_v44 }
 0x2aa   :  { %v2542_v19 = vsel %vm2541_vm6, %v2540_v50, %v2535_v14 }
 0x2ab   :  { %v2549_v39 = vsel %vm2548_vm7, %v2547_v37, %v2542_v19  ;;  %v2026_v1 = vpop.xlane.xlu0 %2025  ;;  %v2029_v16 = vpop.xlane.xlu1 %2028 }
 0x2ac   :  { %v2556_v27 = vsel %vm2555_vm8, %v2554_v59, %v2549_v39  ;;  %v2582_v43 = vrot.slane %v2026_v1, %v4716_v4  ;;  %v2589_v34 = vrot.slane %v2029_v16, %v4719_v48 }
 0x2ad   :  { %v2563_v22 = vsel %vm2562_vm9, %v2561_v9, %v2556_v27 }
 0x2af   :  { %v2020_v40 = vpop.xlane.xlu0 %2019  ;;  %v2023_v21 = vpop.xlane.xlu1 %2022 }
 0x2b0   :  { %v2568_v47 = vrot.slane %v2020_v40, %v4707_v3  ;;  %v2575_v29 = vrot.slane %v2023_v21, %v4712_v6 }
 0x2b2   :  { %v2570_v63 = vsel %vm2569_vm10, %v2568_v47, %v2563_v22 }
 0x2b3   :  { %v2577_v51 = vsel %vm2576_vm11, %v2575_v29, %v2570_v63  ;;  %v2038_v60 = vpop.xlane.xlu0 %2037  ;;  %v2041_v23 = vpop.xlane.xlu1 %2040 }
 0x2b4   :  { %v2584_v11 = vsel %vm2583_vm12, %v2582_v43, %v2577_v51  ;;  %v2610_v24 = vrot.slane %v2038_v60, %v5015_v46  ;;  %v2617_v33 = vrot.slane %v2041_v23, %v5019_v62 }
 0x2b5   :  { %v2591_v32 = vsel %vm2590_vm13, %v2589_v34, %v2584_v11 }
 0x2b7   :  { %v2032_v7 = vpop.xlane.xlu0 %2031  ;;  %v2035_v58 = vpop.xlane.xlu1 %2034 }
 0x2b8   :  { %v2596_v20 = vrot.slane %v2032_v7, %v4724_v61  ;;  %v2603_v56 = vrot.slane %v2035_v58, %v4734_v38 }
 0x2ba   :  { %v2598_v8 = vsel %vm2597_vm14, %v2596_v20, %v2591_v32 }
 0x2bb   :  { %v2605_v14 = vsel %vm2604_vm15, %v2603_v56, %v2598_v8  ;;  %v2050_v15 = vpop.xlane.xlu0 %2049  ;;  %v2053_v55 = vpop.xlane.xlu1 %2052 }
 0x2bc   :  { %v2612_v50 = vsel %vm2611_vm0, %v2610_v24, %v2605_v14  ;;  %v2632_v39 = vrot.slane %v2050_v15, %v4668_v53  ;;  %v2637_v1 = vrot.slane %v2053_v55, %v4677_v18 }
 0x2bd   :  { %v2619_v37 = vsel %vm2618_vm2, %v2617_v33, %v2612_v50 }
 0x2bf   :  { %v2044_v12 = vpop.xlane.xlu0 %2043  ;;  %v2047_v19 = vpop.xlane.xlu1 %2046 }
 0x2c0   :  { %v2623_v59 = vrot.slane %v2044_v12, %v4660_v49  ;;  %v2627_v9 = vrot.slane %v2047_v19, %v4663_v0 }
 0x2c2   :  { %v2628_v27 = vsel %vm2520_vm3, %v2627_v9, %v2623_v59 }
 0x2c3   :  { %v2062_v16 = vpop.xlane.xlu0 %2061  ;;  %v2633_v22 = vsel %vm2527_vm4, %v2632_v39, %v2628_v27  ;;  %v2065_v40 = vpop.xlane.xlu1 %2064 }
 0x2c4   :  { %v2638_v47 = vsel %vm2534_vm5, %v2637_v1, %v2633_v22  ;;  %v2652_v34 = vrot.slane %v2062_v16, %v4690_v52  ;;  %v2657_v60 = vrot.slane %v2065_v40, %v4694_v57 }
 0x2c7   :  { %v2056_v21 = vpop.xlane.xlu0 %2055  ;;  %v2059_v43 = vpop.xlane.xlu1 %2058 }
 0x2c8   :  { %v2642_v29 = vrot.slane %v2056_v21, %v4681_v31  ;;  %v2647_v63 = vrot.slane %v2059_v43, %v4686_v44 }
 0x2ca   :  { %v2643_v51 = vsel %vm2541_vm6, %v2642_v29, %v2638_v47 }
 0x2cb   :  { %v2648_v5 = vsel %vm2548_vm7, %v2647_v63, %v2643_v51  ;;  %v2074_v11 = vpop.xlane.xlu0 %2073  ;;  %v2077_v2 = vpop.xlane.xlu1 %2076  ;;  %v2860_v63 = vrot.slane %v4625_v30, %v4660_v49 }
 0x2cc   :  { %v2653_v23 = vsel %vm2555_vm8, %v2652_v34, %v2648_v5  ;;  %v2672_v14 = vrot.slane %v2074_v11, %v4716_v4  ;;  %v2677_v55 = vrot.slane %v2077_v2, %v4719_v48  ;;  %v2864_v34 = vrot.slane %v4627_v17, %v4663_v0 }
 0x2cd   :  { %v2658_v32 = vsel %vm2562_vm9, %v2657_v60, %v2653_v23  ;;  %v2869_v5 = vrot.slane %v4621_v25, %v4668_v53  ;;  %v2879_v17 = vrot.slane %v4633_v35, %v4681_v31 }
 0x2ce   :  { %v2865_v11 = vsel %vm2520_vm3, %v2864_v34, %v2860_v63 }
 0x2cf   :  { %v2068_v7 = vpop.xlane.xlu0 %2067  ;;  %v2071_v58 = vpop.xlane.xlu1 %2070  ;;  %v2870_v30 = vsel %vm2527_vm4, %v2869_v5, %v2865_v11 }
 0x2d0   :  { %v2662_v20 = vrot.slane %v2068_v7, %v4707_v3  ;;  %v2667_v56 = vrot.slane %v2071_v58, %v4712_v6 }
 0x2d2   :  { %v2663_v24 = vsel %vm2569_vm10, %v2662_v20, %v2658_v32  ;;  %v2874_v32 = vrot.slane %v4623_v28, %v4677_v18  ;;  %v2884_v28 = vrot.slane %v4635_v36, %v4686_v44 }
 0x2d3   :  { %v2668_v8 = vsel %vm2576_vm11, %v2667_v56, %v2663_v24  ;;  %v2086_v33 = vpop.xlane.xlu0 %2085  ;;  %v2089_v15 = vpop.xlane.xlu1 %2088 }
 0x2d4   :  { %v2673_v50 = vsel %vm2583_vm12, %v2672_v14, %v2668_v8  ;;  %v2692_v1 = vrot.slane %v2086_v33, %v5015_v46  ;;  %v2697_v16 = vrot.slane %v2089_v15, %v5019_v62  ;;  %v2875_v25 = vsel %vm2534_vm5, %v2874_v32, %v2870_v30  ;;  %v5263_v30 = vld [vmem:[#allocation20_spill] sm:$0xff] }
 0x2d5   :  { %v2678_v9 = vsel %vm2590_vm13, %v2677_v55, %v2673_v50  ;;  %v2880_v33 = vsel %vm2541_vm6, %v2879_v17, %v2875_v25  ;;  %v2889_v55 = vrot.slane %v4629_v26, %v4690_v52  ;;  %v2899_v26 = vrot.slane %v4641_v13, %v4707_v3  ;;  %v5264_v25 = vld [vmem:[#allocation25_spill] sm:$0xff] }
 0x2d7   :  { %v2080_v12 = vpop.xlane.xlu0 %2079  ;;  %v2083_v19 = vpop.xlane.xlu1 %2082 }
 0x2d8   :  { %v2682_v59 = vrot.slane %v2080_v12, %v4724_v61  ;;  %v2687_v39 = vrot.slane %v2083_v19, %v4734_v38  ;;  %v2885_v12 = vsel %vm2548_vm7, %v2884_v28, %v2880_v33  ;;  %v5265_v28 = vld [vmem:[#allocation21_spill] sm:$0xff] }
 0x2d9   :  { %v2914_v33 = vrot.slane %v5265_v28, %v4719_v48 }
 0x2da   :  { %v2683_v27 = vsel %vm2597_vm14, %v2682_v59, %v2678_v9 }
 0x2db   :  { %v2688_v22 = vsel %vm2604_vm15, %v2687_v39, %v2683_v27  ;;  %v2098_v40 = vpop.xlane.xlu0 %2097  ;;  %v2101_v21 = vpop.xlane.xlu1 %2100  ;;  %v2890_v27 = vsel %vm2555_vm8, %v2889_v55, %v2885_v12 }
 0x2dc   :  { %v2693_v47 = vsel %vm2611_vm0, %v2692_v1, %v2688_v22  ;;  %v2711_v24 = vrot.slane %v2098_v40, %v4668_v53  ;;  %v2716_v35 = vrot.slane %v2101_v21, %v4677_v18  ;;  %v2894_v1 = vrot.slane %v4631_v45, %v4694_v57  ;;  %v5262_v45 = vld [vmem:[#allocation22_spill] sm:$0xff] }
 0x2dd   :  { %v2698_v29 = vsel %vm2618_vm2, %v2697_v16, %v2693_v47  ;;  %v2904_v34 = vrot.slane %v5262_v45, %v4712_v6  ;;  %v5268_v45 = vld [vmem:[#allocation11_spill] sm:$0xff] }
 0x2de   :  { %v5059_v43 = vsel %vm3173_vm1, %v2698_v29, %v2619_v37  ;;  %v2895_v21 = vsel %vm2562_vm9, %v2894_v1, %v2890_v27 }
 0x2df   :  { %v2092_v51 = vpop.xlane.xlu0 %2091  ;;  %v2095_v60 = vpop.xlane.xlu1 %2094  ;;  %v2900_v5 = vsel %vm2569_vm10, %v2899_v26, %v2895_v21 }
 0x2e0   :  { %v2702_v37 = vrot.slane %v2092_v51, %v4660_v49  ;;  %v2706_v7 = vrot.slane %v2095_v60, %v4663_v0 }
 0x2e2   :  { %v2707_v56 = vsel %vm2520_vm3, %v2706_v7, %v2702_v37  ;;  %v2905_v37 = vsel %vm2576_vm11, %v2904_v34, %v2900_v5 }
 0x2e3   :  { %v2110_v23 = vpop.xlane.xlu0 %2109  ;;  %v2113_v2 = vpop.xlane.xlu1 %2112  ;;  %v2712_v14 = vsel %vm2527_vm4, %v2711_v24, %v2707_v56  ;;  %v2919_v56 = vrot.slane %v5264_v25, %v4724_v61 }
 0x2e4   :  { %v2717_v59 = vsel %vm2534_vm5, %v2716_v35, %v2712_v14  ;;  %v2731_v40 = vrot.slane %v2110_v23, %v4690_v52  ;;  %v2736_v51 = vrot.slane %v2113_v2, %v4694_v57 }
 0x2e7   :  { %v2104_v20 = vpop.xlane.xlu0 %2103  ;;  %v2107_v58 = vpop.xlane.xlu1 %2106 }
 0x2e8   :  { %v2721_v15 = vrot.slane %v2104_v20, %v4681_v31  ;;  %v2726_v19 = vrot.slane %v2107_v58, %v4686_v44  ;;  %v2909_v20 = vrot.slane %v5263_v30, %v4716_v4 }
 0x2ea   :  { %v2722_v9 = vsel %vm2541_vm6, %v2721_v15, %v2717_v59  ;;  %v2910_v2 = vsel %vm2583_vm12, %v2909_v20, %v2905_v37 }
 0x2eb   :  { %v2122_v8 = vpop.xlane.xlu0 %2121  ;;  %v2125_v50 = vpop.xlane.xlu1 %2124  ;;  %v2727_v16 = vsel %vm2548_vm7, %v2726_v19, %v2722_v9  ;;  %v2915_v59 = vsel %vm2590_vm13, %v2914_v33, %v2910_v2  ;;  %v5274_v2 = vld [vmem:[#allocation13_spill] sm:$0xff] }
 0x2ec   :  { %v2732_v29 = vsel %vm2555_vm8, %v2731_v40, %v2727_v16  ;;  %v2751_v24 = vrot.slane %v2122_v8, %v4716_v4  ;;  %v2756_v19 = vrot.slane %v2125_v50, %v4719_v48  ;;  %v2920_v9 = vsel %vm2597_vm14, %v2919_v56, %v2915_v59  ;;  %v5266_v8 = vld [vmem:[#allocation26_spill] sm:$0xff]  ;;  %v5275_v56 = vld [vmem:[#allocation15_spill] sm:$0xff] }
 0x2ed   :  { %v2737_v13 = vsel %vm2562_vm9, %v2736_v51, %v2732_v29  ;;  %v5267_v50 = vld [vmem:[#allocation10_spill] sm:$0xff]  ;;  %v5269_v51 = vld [vmem:[#allocation8_spill] sm:$0xff]  ;;  %v2835_v25 = vrot.slane %v5274_v2, %v4719_v48 }
 0x2ee   :  { %v2800_v21 = vrot.slane %v5267_v50, %v4681_v31  ;;  %v5279_v59 = vld [vmem:[#allocation18_spill] sm:$0xff] }
 0x2ef   :  { %v2116_v36 = vpop.xlane.xlu0 %2115  ;;  %v2119_v39 = vpop.xlane.xlu1 %2118 }
 0x2f0   :  { %v2741_v63 = vrot.slane %v2116_v36, %v4707_v3  ;;  %v2746_v23 = vrot.slane %v2119_v39, %v4712_v6  ;;  %v2924_v39 = vrot.slane %v5266_v8, %v4734_v38  ;;  %v5280_v8 = vld [vmem:[#allocation19_spill] sm:$0xff] }
 0x2f2   :  { %v2742_v32 = vsel %vm2569_vm10, %v2741_v63, %v2737_v13  ;;  %v5271_v13 = vld [vmem:[#allocation23_spill] sm:$0xff] }
 0x2f3   :  { %v5094_v22 = vpop.xlane.xlu0 %2133  ;;  %v5099_v47 = vpop.xlane.xlu1 %2136  ;;  %v2747_v58 = vsel %vm2576_vm11, %v2746_v23, %v2742_v32  ;;  %v2929_v23 = vrot.slane %v5271_v13, %v5015_v46 }
 0x2f4   :  { %v2752_v15 = vsel %vm2583_vm12, %v2751_v24, %v2747_v58  ;;  %v2825_v24 = vrot.slane %v5275_v56, %v4712_v6  ;;  %v2840_v6 = vrot.slane %v5279_v59, %v4724_v61 }
 0x2f5   :  { %v2757_v27 = vsel %vm2590_vm13, %v2756_v19, %v2752_v15  ;;  %v2776_v19 = vrot.slane %v5099_v47, %v5019_v62 }
 0x2f7   :  { %v2128_v60 = vpop.xlane.xlu0 %2127  ;;  %v2131_v11 = vpop.xlane.xlu1 %2130 }
 0x2f8   :  { %v2761_v35 = vrot.slane %v2128_v60, %v4724_v61  ;;  %v2766_v16 = vrot.slane %v2131_v11, %v4734_v38  ;;  %v2810_v60 = vrot.slane %v5269_v51, %v4690_v52  ;;  %v5270_v11 = vld [vmem:[#allocation9_spill] sm:$0xff]  ;;  %v5273_v52 = vld [vmem:[#allocation14_spill] sm:$0xff] }
 0x2f9   :  { %v2815_v31 = vrot.slane %v5270_v11, %v4694_v57  ;;  %v2820_v20 = vrot.slane %v5273_v52, %v4707_v3  ;;  %v5277_v3 = vld [vmem:[#allocation24_spill] sm:$0xff]  ;;  %v5281_v11 = vld [vmem:[#allocation27_spill] sm:$0xff] }
 0x2fa   :  { %v2934_v15 = vrot.slane %v5277_v3, %v5019_v62 }
 0x2fb   :  { %v2146_v7 = vpop.xlane.xlu0 %2145  ;;  %v2149_v17 = vpop.xlane.xlu1 %2148 }
 0x2fc   :  { %v2790_v1 = vrot.slane %v2146_v7, %v4668_v53  ;;  %v2805_v53 = vrot.slane %v5268_v45, %v4686_v44  ;;  %v5272_v7 = vld [vmem:[#allocation12_spill] sm:$0xff] }
 0x2fd   :  { %v2830_v30 = vrot.slane %v5272_v7, %v4716_v4  ;;  %v5276_v4 = vld [vmem:[#allocation16_spill] sm:$0xff] }
 0x2ff   :  { %v2140_v14 = vpop.xlane.xlu0 %2139  ;;  %v2143_v12 = vpop.xlane.xlu1 %2142 }
 0x300   :  { %v2781_v55 = vrot.slane %v2140_v14, %v4660_v49  ;;  %v2785_v36 = vrot.slane %v2143_v12, %v4663_v0  ;;  %v2795_v49 = vrot.slane %v2149_v17, %v4677_v18  ;;  %v2762_v0 = vsel %vm2597_vm14, %v2761_v35, %v2757_v27 }
 0x301   :  { %v2925_v18 = vsel %vm2604_vm15, %v2924_v39, %v2920_v9  ;;  %v2767_v32 = vsel %vm2604_vm15, %v2766_v16, %v2762_v0  ;;  %v2771_v17 = vrot.slane %v5094_v22, %v5015_v46  ;;  %v2850_v14 = vrot.slane %v5276_v4, %v5015_v46 }
 0x302   :  { %v2786_v26 = vsel %vm2520_vm3, %v2785_v36, %v2781_v55  ;;  %v2930_v28 = vsel %vm2611_vm0, %v2929_v23, %v2925_v18  ;;  %v5278_v55 = vld [vmem:[#allocation17_spill] sm:$0xff]  ;;  %v2845_v39 = vrot.slane %v5280_v8, %v4734_v38  ;;  %v3151_v27 = vrot.slane %v4975_v10, %v4719_v48 }
 0x303   :  { %v2323_v40 = vpop.xlane.xlu0 %2322  ;;  %v2791_v29 = vsel %vm2527_vm4, %v2790_v1, %v2786_v26  ;;  %v2278_v63 = vpop.xlane.xlu1 %2277  ;;  %v2772_v22 = vsel %vm2611_vm0, %v2771_v17, %v2767_v32  ;;  %v2855_v12 = vrot.slane %v5278_v55, %v5019_v62  ;;  %v2935_v1 = vsel %vm2618_vm2, %v2934_v15, %v2930_v28 }
 0x304   :  { %v2796_v34 = vsel %vm2534_vm5, %v2795_v49, %v2791_v29  ;;  %vm3175_vm3 = vcmask 1042434   ;;  %v2777_v26 = vsel %vm2618_vm2, %v2776_v19, %v2772_v22  ;;  %v3082_v50 = vrot.slane %v2323_v40, %v4734_v38 }
 0x305   :  { %v2801_v5 = vsel %vm2541_vm6, %v2800_v21, %v2796_v34  ;;  %v3008_v21 = vrot.slane %v2278_v63, %v5015_v46  ;;  %vm3177_vm4 = vcmask 1043459   ;;  %vm3179_vm5 = vcmask 1044484  }
 0x306   :  { %v2806_v37 = vsel %vm2548_vm7, %v2805_v53, %v2801_v5  ;;  %vm3181_vm6 = vcmask 1045509   ;;  %v3176_v53 = vsel %vm3175_vm3, %v2777_v26, %v5059_v43  ;;  %vm3183_vm7 = vcmask 1046534  }
 0x307   :  { %v2281_v44 = vpop.xlane.xlu0 %2280  ;;  %v2811_v58 = vsel %vm2555_vm8, %v2810_v60, %v2806_v37  ;;  %v2368_v57 = vpop.xlane.xlu1 %2367  ;;  %v3083_v63 = vsel %vm2604_vm15, %v3082_v50, %v4810_v42  ;;  %v3152_v42 = vsel %vm2590_vm13, %v3151_v27, %v4871_v41  ;;  %vm3185_vm8 = vcmask 1047559  }
 0x308   :  { %v2816_v33 = vsel %vm2562_vm9, %v2815_v31, %v2811_v58  ;;  %v3013_v45 = vrot.slane %v2281_v44, %v5019_v62  ;;  %v3156_v40 = vrot.slane %v2368_v57, %v4724_v61  ;;  %v3009_v31 = vsel %vm2611_vm0, %v3008_v21, %v5281_v11 }
 0x309   :  { %v2821_v35 = vsel %vm2569_vm10, %v2820_v20, %v2816_v33 }
 0x30a   :  { %v2826_v36 = vsel %vm2576_vm11, %v2825_v24, %v2821_v35  ;;  %v3014_v23 = vsel %vm2618_vm2, %v3013_v45, %v3009_v31  ;;  %v3157_v37 = vsel %vm2597_vm14, %v3156_v40, %v3152_v42 }
 0x30b   :  { %v2371_v9 = vpop.xlane.xlu0 %2370  ;;  %v2326_v16 = vpop.xlane.xlu1 %2325  ;;  %v2831_v49 = vsel %vm2583_vm12, %v2830_v30, %v2826_v36 }
 0x30c   :  { %v2836_v47 = vsel %vm2590_vm13, %v2835_v25, %v2831_v49  ;;  %v3087_v0 = vrot.slane %v2326_v16, %v5015_v46  ;;  %v3161_v60 = vrot.slane %v2371_v9, %v4734_v38 }
 0x30d   :  { %v2841_v29 = vsel %vm2597_vm14, %v2840_v6, %v2836_v47 }
 0x30e   :  { %v2846_v10 = vsel %vm2604_vm15, %v2845_v39, %v2841_v29  ;;  %v3088_v43 = vsel %vm2611_vm0, %v3087_v0, %v3083_v63  ;;  %v3162_v30 = vsel %vm2604_vm15, %v3161_v60, %v3157_v37 }
 0x30f   :  { %v2374_v48 = vpop.xlane.xlu0 %2373  ;;  %v2329_v34 = vpop.xlane.xlu1 %2328  ;;  %v2851_v51 = vsel %vm2611_vm0, %v2850_v14, %v2846_v10 }
 0x310   :  { %v3092_v18 = vrot.slane %v2329_v34, %v5019_v62  ;;  %v2856_v5 = vsel %vm2618_vm2, %v2855_v12, %v2851_v51  ;;  %v3166_v61 = vrot.slane %v2374_v48, %v5015_v46 }
 0x311   :  { %v3178_v13 = vsel %vm3177_vm4, %v2856_v5, %v3176_v53 }
 0x312   :  { %v3093_v38 = vsel %vm2618_vm2, %v3092_v18, %v3088_v43  ;;  %v3180_v32 = vsel %vm3179_vm5, %v2935_v1, %v3178_v13  ;;  %v3167_v41 = vsel %vm2611_vm0, %v3166_v61, %v3162_v30 }
 0x313   :  { %v2377_v44 = vpop.xlane.xlu1 %2376  ;;  %v3182_v7 = vsel %vm3181_vm6, %v3014_v23, %v3180_v32  ;;  %v2381_v17 = vpop.permute.xlu0 %2380 }
 0x314   :  { %v3171_v46 = vrot.slane %v2377_v44, %v5019_v62  ;;  %v3184_v52 = vsel %vm3183_vm7, %v3093_v38, %v3182_v7  ;;  %vm2382_vm9 = vcmp.ge.s32.totalorder %v4652_v54, %v2381_v17 }
 0x316   :  { %v3172_v20 = vsel %vm2618_vm2, %v3171_v46, %v3167_v41 }
 0x317   :  { %v3186_v58 = vsel %vm3185_vm8, %v3172_v20, %v3184_v52 }
 0x318   :  { %v3188_v57 = vsel %vm2382_vm9, 0.0, %v3186_v58 }
 0x319   :  { %3189 = vst [vmem:[#allocation4] sm:$0xff] %v3188_v57 }
 0x31a   :  { %3839 = shalt.err (!%p3836_p12)
}
 0x31b   :  { %s3840_s13 = scalar_lea.hbm %s5239_s9, 128 }
 0x31c   :  { %p3841_p13 = scmp.ne.s32.totalorder %s5239_s9, %s3840_s13  ;;  %p3844_p0 = scmp.lt.u32.totalorder %s3840_s13, %s5239_s9 }
 0x31e   :  { %p3846_p1 = pnand %p3844_p0, %p3841_p13 }
 0x320   :  { %3849 = shalt.err (!%p3846_p1)
}
 0x321   :  { %3209 = dma.vmem_to_hbm [thread:$0]  %s3207_s0, 128, %s5239_s9, [#allocation5]  }
 0x322   :  { %3850 = dma.done.wait [#allocation3], 128  }
 0x323   :  { %3851 = vsyncadd [#allocation3], 4294967168 }
 0x324   :  { %3852 = dma.done.wait [#allocation5], 128  }
 0x325   :  { %3853 = vsyncadd [#allocation5], 4294967168 }
 0x326   :  { %3216 = vsyncpa [#allocation3], 1 }
 0x327   :  { %3217 = vsyncpa [#allocation5], 1 }

</bundles_post_ra>
